<compile_context>
chip_gen: v7x
topology: tpu7x:2x2x1
jax: 0.10.0
libtpu: 0.0.40
codegen_flags: <defaults>
</compile_context>

<pallas_src>
import functools

import jax
import jax.numpy as jnp
import numpy as np
from jax.experimental import pallas as pl
from jax.experimental.pallas import tpu as pltpu

N_OPS = 5  # ['none', 'skip_connect', 'avg_pool_3x3', 'max_pool_3x3', 'std_conv_3x3']
_EPS = 1e-5

_VMEM = pl.BlockSpec(memory_space=pltpu.MemorySpace.VMEM)
_SMEM = pl.BlockSpec(memory_space=pltpu.MemorySpace.SMEM)


# ----------------------------------------------------------------------------- kernel


def _bn_rows(y, inv_n):
  """Training-mode BatchNorm (affine=False) on a (rows, NHW) slab; one-pass stats.

  Each row is one channel, so per-row stats == per-channel BN stats even when several
  edges' conv outputs are stacked along the row axis.
  """
  mu = jnp.sum(y, axis=1, keepdims=True) * inv_n
  var = jnp.maximum(jnp.sum(y * y, axis=1, keepdims=True) * inv_n - mu * mu, 0.0)
  return (y - mu) * jax.lax.rsqrt(var + _EPS)


def _search_cell_kernel(n_nodes, width, alpha_ref, x_ref, wpre_ref, wconv_ref,
                        mask_ref, invcnt_ref, out_ref):
  """Whole SearchCell forward in one launch; lane-dense (features, N*H*W) layout.

  alpha_ref : (n_edges, 5)        SMEM mixing weights, node-major edge order
                                  (edge e = i*(i+1)/2 + j for node i, source j)
  x_ref     : (C_p, NHW)          input activations, flat spatial (n-major, h, w)
  wpre_ref  : (C, C_p)            1x1 preproc conv weight
  wconv_ref : (n_edges*C, 9C)     3x3 conv weights, SOURCE-major edge order; rows of
                                  edge (i, j) are a contiguous C-block; im2col cols =
                                  tap*C + c_in, tap = 3*dy + dx
  mask_ref  : (9, C, NHW)         1.0 where the tap's neighbour is inside the image
  invcnt_ref: (C, NHW)            1 / (# in-image taps)   (count_include_pad=False)
  out_ref   : (n_nodes*C, NHW)    concat(states[1:]) along the channel/sublane axis
  """
  nhw = x_ref.shape[1]
  c = wpre_ref.shape[0]
  inv_n = jnp.float32(1.0 / nhw)

  # preproc: ReLU -> 1x1 conv as (C, C_p) @ (C_p, NHW) on the MXU -> BN(affine=False)
  s0 = _bn_rows(
      jnp.dot(wpre_ref[...], jnp.maximum(x_ref[...], 0.0),
              preferred_element_type=jnp.float32),
      inv_n)

  # Host-precomputed constants, loaded once for all sources.
  inv_cnt = invcnt_ref[...]                       # (C, NHW)
  tap_mask = [mask_ref[t] for t in range(9)]      # each (C, NHW)
  tap_valid = [m > 0.0 for m in tap_mask]
  tap_off = [(dy - 1) * width + (dx - 1) for dy in range(3) for dx in range(3)]

  def edge_idx(i, j):                             # node-major edge index (alphas)
    return i * (i + 1) // 2 + j

  states = [s0]
  accs = [None] * n_nodes
  wrow = 0                                        # row offset into source-major weights

  # Source-major sweep: when state j is available, emit its contribution to every
  # downstream node (nodes j..n_nodes-1) using shared tap / pool slabs and ONE
  # batched conv matmul.  After sweeping source j, node j is complete.
  for j in range(n_nodes):
    x = states[j]                                 # (C, NHW), VMEM/vreg resident

    # Shared per-source data: masked taps, pool windows (built once per source).
    win_sum = x                                   # centre tap (always in-image)
    win_max = x
    taps = [None] * 9
    taps[4] = jnp.maximum(x, 0.0)                 # centre: no roll / mask needed
    for t in range(9):
      if t == 4:
        continue
      off = tap_off[t]
      # shifted[p] = x[p + off]; out-of-image / batch-wrap positions masked below.
      shifted = pltpu.roll(x, shift=(-off) % nhw, axis=1)
      xs = shifted * tap_mask[t]                  # zero contribution outside image
      win_sum = win_sum + xs
      win_max = jnp.maximum(win_max, jnp.where(tap_valid[t], shifted, x))
      taps[t] = jnp.maximum(xs, 0.0)              # ReLU'd tap row-block for im2col

    avg_bn = _bn_rows(win_sum * inv_cnt, inv_n)   # avg_pool_3x3 -> BN (shared)
    max_bn = _bn_rows(win_max, inv_n)             # max_pool_3x3 -> BN (shared)
    im2col = jnp.concatenate(taps, axis=0)        # (9C, NHW), shared by all edges of j

    # std_conv_3x3 for ALL outgoing edges of source j in one MXU contraction:
    # (k*C, 9C) @ (9C, NHW); row-wise BN == per-channel BN of each edge's output.
    k_edges = n_nodes - j
    w_blk = wconv_ref[wrow:wrow + k_edges * c, :]
    conv_bn = _bn_rows(
        jnp.dot(w_blk, im2col, preferred_element_type=jnp.float32), inv_n)
    wrow += k_edges * c

    for idx, i in enumerate(range(j, n_nodes)):
      e = edge_idx(i, j)
      mixed = (alpha_ref[e, 1] * x                                 # skip_connect
               + alpha_ref[e, 2] * avg_bn                          # avg_pool_3x3
               + alpha_ref[e, 3] * max_bn                          # max_pool_3x3
               + alpha_ref[e, 4] * conv_bn[idx * c:(idx + 1) * c, :])  # std_conv_3x3
      # alpha_ref[e, 0] is the 'none' (Zero) op: contributes 0.
      accs[i] = mixed if accs[i] is None else accs[i] + mixed

    states.append(accs[j])                        # node j now has all its inputs

  # concat(states[1:]) along the channel (sublane) axis -> single lane-dense store.
  out_ref[...] = jnp.concatenate(states[1:], axis=0)


# ----------------------------------------------------------------------------- wrapper


@functools.lru_cache(maxsize=None)
def _tap_constants(n, h, w, c):
  """Host-side constants: per-tap in-image masks (9, C, NHW) and 1/count (C, NHW)."""
  hh, ww = np.arange(h), np.arange(w)
  per_tap = []
  for dy in range(3):
    for dx in range(3):
      mh = ((hh + dy - 1 >= 0) & (hh + dy - 1 < h)).astype(np.float32)
      mw = ((ww + dx - 1 >= 0) & (ww + dx - 1 < w)).astype(np.float32)
      per_tap.append(np.outer(mh, mw))                              # (h, w)
  per_tap = np.stack(per_tap, 0)                                    # (9, h, w)
  inv_cnt = (1.0 / per_tap.sum(0)).astype(np.float32)               # (h, w)
  masks = np.broadcast_to(per_tap[:, None, None], (9, c, n, h, w))
  inv_cnt = np.broadcast_to(inv_cnt[None, None], (c, n, h, w))
  return (jnp.asarray(masks.reshape(9, c, n * h * w)),
          jnp.asarray(inv_cnt.reshape(c, n * h * w)))


@functools.partial(jax.jit, static_argnames=("n_nodes",))
def _cell_forward(x_nchw, w_pre, w_conv_src, alphas, masks, inv_cnt, *, n_nodes):
  n, c_p, h, w = x_nchw.shape
  c = w_pre.shape[0]
  nhw = n * h * w
  # NCHW -> lane-dense (C_p, N*H*W) with flat spatial in n-major order.
  x_flat = jnp.transpose(x_nchw.astype(jnp.float32), (1, 0, 2, 3)).reshape(c_p, nhw)
  out_flat = pl.pallas_call(
      functools.partial(_search_cell_kernel, n_nodes, w),
      out_shape=jax.ShapeDtypeStruct((n_nodes * c, nhw), jnp.float32),
      in_specs=[_SMEM, _VMEM, _VMEM, _VMEM, _VMEM, _VMEM],
      out_specs=_VMEM,
  )(alphas, x_flat, w_pre, w_conv_src, masks, inv_cnt)
  # (n_nodes*C, N*H*W) -> NCHW
  return jnp.transpose(out_flat.reshape(n_nodes * c, n, h, w), (1, 0, 2, 3))


class SearchCellPallas:
  """Pallas port of SearchCell(n_nodes, C_p, C, bn_momentum) with deterministic init."""

  def __init__(self, n_nodes, c_p, c, key):
    self.n_nodes, self.c_p, self.c = n_nodes, c_p, c
    n_edges = n_nodes * (n_nodes + 1) // 2
    k_pre, k_dag = jax.random.split(key)
    # preproc 1x1 conv weight stored as (C_out, C_in) so conv == (C,Cp)@(Cp,NHW)
    self.w_pre = (jax.random.normal(k_pre, (c, c_p), jnp.float32)
                  * (1.0 / np.sqrt(c_p)))
    # per-edge 3x3 conv weights in im2col layout (n_edges, C_out, 9*C_in);
    # column index = tap*C + c_in with tap = 3*dy + dx  (== torch w[c_out, c_in, dy, dx])
    self.w_conv = (jax.random.normal(k_dag, (n_edges, c, 9 * c), jnp.float32)
                   * (1.0 / np.sqrt(9 * c)))
    # Source-major kernel-facing layout: for each source j, the C-blocks of its
    # outgoing edges (to nodes j..n_nodes-1) are contiguous -> one matmul per source.
    order = [i * (i + 1) // 2 + j
             for j in range(n_nodes) for i in range(j, n_nodes)]
    self.w_conv_src = self.w_conv[np.asarray(order)].reshape(n_edges * c, 9 * c)

  def __call__(self, s_nchw, w_dag):
    n, _, h, w = s_nchw.shape
    # stack per-node (1+i, N_OPS) alpha rows into (n_edges, N_OPS); node-major edge
    # order matches the kernel's edge_idx(i, j) = i*(i+1)/2 + j indexing.
    alphas = jnp.concatenate([jnp.asarray(a, jnp.float32) for a in w_dag], axis=0)
    masks, inv_cnt = _tap_constants(n, h, w, self.c)
    return _cell_forward(s_nchw, self.w_pre, self.w_conv_src, alphas, masks, inv_cnt,
                         n_nodes=self.n_nodes)


# ----------------------------------------------------------------------------- main

if __name__ == "__main__":
  key = jax.random.PRNGKey(0)
  n_nodes, c_p, c = 3, 8, 8
  batch, height, width = 2, 8, 8   # N*H*W = 128 -> exactly one lane-dense vreg width

  k_x, k_cell, k_alpha = jax.random.split(key, 3)
  x = jax.random.normal(k_x, (batch, c_p, height, width), jnp.float32)  # NCHW

  # architecture weights: one (n_edges_i, n_ops) row per node, softmaxed over ops
  w_dag = []
  for i in range(n_nodes):
    k_alpha, sub = jax.random.split(k_alpha)
    logits = jax.random.normal(sub, (1 + i, N_OPS), jnp.float32)
    w_dag.append(jax.nn.softmax(logits, axis=-1))

  cell = SearchCellPallas(n_nodes, c_p, c, k_cell)
  out = jax.block_until_ready(cell(x, w_dag))

  assert out.shape == (batch, n_nodes * c, height, width), out.shape
  assert bool(jnp.all(jnp.isfinite(out)))
  print("KERNEL_OK")
</pallas_src>

<mosaic_0001>
module attributes {stable_mosaic.version = 11 : i64} {
  func.func @_search_cell_kernel(%arg0: memref<6x5xf32, #tpu.memory_space<smem>>, %arg1: memref<8x128xf32, #tpu.memory_space<vmem>>, %arg2: memref<8x8xf32, #tpu.memory_space<vmem>>, %arg3: memref<48x72xf32, #tpu.memory_space<vmem>>, %arg4: memref<9x8x128xf32, #tpu.memory_space<vmem>>, %arg5: memref<8x128xf32, #tpu.memory_space<vmem>>, %arg6: memref<24x128xf32, #tpu.memory_space<vmem>>) attributes {dimension_semantics = [], scalar_prefetch = 0 : i64, scratch_operands = 0 : i64, tpu.core_type = #tpu.core_type<tc>} {
    %c0 = arith.constant 0 : index
    %c0_0 = arith.constant 0 : index
    %0 = vector.load %arg2[%c0, %c0_0] : memref<8x8xf32, #tpu.memory_space<vmem>>, vector<8x8xf32>
    %c0_1 = arith.constant 0 : index
    %c0_2 = arith.constant 0 : index
    %1 = vector.load %arg1[%c0_1, %c0_2] : memref<8x128xf32, #tpu.memory_space<vmem>>, vector<8x128xf32>
    %cst = arith.constant 0.000000e+00 : f32
    %2 = vector.broadcast %cst : f32 to vector<8x128xf32>
    %3 = arith.maximumf %1, %2 : vector<8x128xf32>
    %cst_3 = arith.constant dense<0.000000e+00> : vector<8x128xf32>
    %4 = tpu.matmul %0, %3, %cst_3 {dimension_numbers = #tpu.dot_dimension_numbers<[1], [0], [0], [1], [0, 0, 1, 1], [], []>} : vector<8x8xf32>, vector<8x128xf32>, vector<8x128xf32> -> vector<8x128xf32>
    %cst_4 = arith.constant dense<0.000000e+00> : vector<8xf32>
    %5 = vector.multi_reduction <add>, %4, %cst_4 [1] : vector<8x128xf32> to vector<8xf32>
    %6 = vector.shape_cast %5 : vector<8xf32> to vector<8x1xf32>
    %cst_5 = arith.constant 7.812500e-03 : f32
    %7 = vector.broadcast %cst_5 : f32 to vector<8x1xf32>
    %8 = arith.mulf %6, %7 : vector<8x1xf32>
    %9 = arith.mulf %4, %4 : vector<8x128xf32>
    %cst_6 = arith.constant dense<0.000000e+00> : vector<8xf32>
    %10 = vector.multi_reduction <add>, %9, %cst_6 [1] : vector<8x128xf32> to vector<8xf32>
    %11 = vector.shape_cast %10 : vector<8xf32> to vector<8x1xf32>
    %cst_7 = arith.constant 7.812500e-03 : f32
    %12 = vector.broadcast %cst_7 : f32 to vector<8x1xf32>
    %13 = arith.mulf %11, %12 : vector<8x1xf32>
    %14 = arith.mulf %8, %8 : vector<8x1xf32>
    %15 = arith.subf %13, %14 : vector<8x1xf32>
    %cst_8 = arith.constant 0.000000e+00 : f32
    %16 = vector.broadcast %cst_8 : f32 to vector<8x1xf32>
    %17 = arith.maximumf %15, %16 : vector<8x1xf32>
    %18 = vector.broadcast %8 : vector<8x1xf32> to vector<8x128xf32>
    %19 = arith.subf %4, %18 : vector<8x128xf32>
    %cst_9 = arith.constant 9.99999974E-6 : f32
    %20 = vector.broadcast %cst_9 : f32 to vector<8x1xf32>
    %21 = arith.addf %17, %20 : vector<8x1xf32>
    %22 = math.rsqrt %21 : vector<8x1xf32>
    %23 = vector.broadcast %22 : vector<8x1xf32> to vector<8x128xf32>
    %24 = arith.mulf %19, %23 : vector<8x128xf32>
    %c0_10 = arith.constant 0 : index
    %c0_11 = arith.constant 0 : index
    %25 = vector.load %arg5[%c0_10, %c0_11] : memref<8x128xf32, #tpu.memory_space<vmem>>, vector<8x128xf32>
    %c0_12 = arith.constant 0 : index
    %c0_13 = arith.constant 0 : index
    %c0_14 = arith.constant 0 : index
    %26 = vector.load %arg4[%c0_12, %c0_13, %c0_14] : memref<9x8x128xf32, #tpu.memory_space<vmem>>, vector<1x8x128xf32>
    %27 = vector.shape_cast %26 : vector<1x8x128xf32> to vector<8x128xf32>
    %c1 = arith.constant 1 : index
    %c0_15 = arith.constant 0 : index
    %c0_16 = arith.constant 0 : index
    %28 = vector.load %arg4[%c1, %c0_15, %c0_16] : memref<9x8x128xf32, #tpu.memory_space<vmem>>, vector<1x8x128xf32>
    %29 = vector.shape_cast %28 : vector<1x8x128xf32> to vector<8x128xf32>
    %c2 = arith.constant 2 : index
    %c0_17 = arith.constant 0 : index
    %c0_18 = arith.constant 0 : index
    %30 = vector.load %arg4[%c2, %c0_17, %c0_18] : memref<9x8x128xf32, #tpu.memory_space<vmem>>, vector<1x8x128xf32>
    %31 = vector.shape_cast %30 : vector<1x8x128xf32> to vector<8x128xf32>
    %c3 = arith.constant 3 : index
    %c0_19 = arith.constant 0 : index
    %c0_20 = arith.constant 0 : index
    %32 = vector.load %arg4[%c3, %c0_19, %c0_20] : memref<9x8x128xf32, #tpu.memory_space<vmem>>, vector<1x8x128xf32>
    %33 = vector.shape_cast %32 : vector<1x8x128xf32> to vector<8x128xf32>
    %c5 = arith.constant 5 : index
    %c0_21 = arith.constant 0 : index
    %c0_22 = arith.constant 0 : index
    %34 = vector.load %arg4[%c5, %c0_21, %c0_22] : memref<9x8x128xf32, #tpu.memory_space<vmem>>, vector<1x8x128xf32>
    %35 = vector.shape_cast %34 : vector<1x8x128xf32> to vector<8x128xf32>
    %c6 = arith.constant 6 : index
    %c0_23 = arith.constant 0 : index
    %c0_24 = arith.constant 0 : index
    %36 = vector.load %arg4[%c6, %c0_23, %c0_24] : memref<9x8x128xf32, #tpu.memory_space<vmem>>, vector<1x8x128xf32>
    %37 = vector.shape_cast %36 : vector<1x8x128xf32> to vector<8x128xf32>
    %c7 = arith.constant 7 : index
    %c0_25 = arith.constant 0 : index
    %c0_26 = arith.constant 0 : index
    %38 = vector.load %arg4[%c7, %c0_25, %c0_26] : memref<9x8x128xf32, #tpu.memory_space<vmem>>, vector<1x8x128xf32>
    %39 = vector.shape_cast %38 : vector<1x8x128xf32> to vector<8x128xf32>
    %c8 = arith.constant 8 : index
    %c0_27 = arith.constant 0 : index
    %c0_28 = arith.constant 0 : index
    %40 = vector.load %arg4[%c8, %c0_27, %c0_28] : memref<9x8x128xf32, #tpu.memory_space<vmem>>, vector<1x8x128xf32>
    %41 = vector.shape_cast %40 : vector<1x8x128xf32> to vector<8x128xf32>
    %cst_29 = arith.constant 0.000000e+00 : f32
    %42 = vector.broadcast %cst_29 : f32 to vector<8x128xf32>
    %43 = arith.cmpf ogt, %27, %42 : vector<8x128xf32>
    %cst_30 = arith.constant 0.000000e+00 : f32
    %44 = vector.broadcast %cst_30 : f32 to vector<8x128xf32>
    %45 = arith.cmpf ogt, %29, %44 : vector<8x128xf32>
    %cst_31 = arith.constant 0.000000e+00 : f32
    %46 = vector.broadcast %cst_31 : f32 to vector<8x128xf32>
    %47 = arith.cmpf ogt, %31, %46 : vector<8x128xf32>
    %cst_32 = arith.constant 0.000000e+00 : f32
    %48 = vector.broadcast %cst_32 : f32 to vector<8x128xf32>
    %49 = arith.cmpf ogt, %33, %48 : vector<8x128xf32>
    %cst_33 = arith.constant 0.000000e+00 : f32
    %50 = vector.broadcast %cst_33 : f32 to vector<8x128xf32>
    %51 = arith.cmpf ogt, %35, %50 : vector<8x128xf32>
    %cst_34 = arith.constant 0.000000e+00 : f32
    %52 = vector.broadcast %cst_34 : f32 to vector<8x128xf32>
    %53 = arith.cmpf ogt, %37, %52 : vector<8x128xf32>
    %cst_35 = arith.constant 0.000000e+00 : f32
    %54 = vector.broadcast %cst_35 : f32 to vector<8x128xf32>
    %55 = arith.cmpf ogt, %39, %54 : vector<8x128xf32>
    %cst_36 = arith.constant 0.000000e+00 : f32
    %56 = vector.broadcast %cst_36 : f32 to vector<8x128xf32>
    %57 = arith.cmpf ogt, %41, %56 : vector<8x128xf32>
    %cst_37 = arith.constant 0.000000e+00 : f32
    %58 = vector.broadcast %cst_37 : f32 to vector<8x128xf32>
    %59 = arith.maximumf %24, %58 : vector<8x128xf32>
    %c9_i32 = arith.constant 9 : i32
    %60 = tpu.dynamic_rotate %24 by %c9_i32 dim 1 : vector<8x128xf32>, i32 -> vector<8x128xf32>
    %61 = arith.mulf %60, %27 : vector<8x128xf32>
    %62 = arith.addf %24, %61 : vector<8x128xf32>
    %63 = arith.select %43, %60, %24 : vector<8x128xi1>, vector<8x128xf32>
    %64 = arith.maximumf %24, %63 : vector<8x128xf32>
    %cst_38 = arith.constant 0.000000e+00 : f32
    %65 = vector.broadcast %cst_38 : f32 to vector<8x128xf32>
    %66 = arith.maximumf %61, %65 : vector<8x128xf32>
    %c8_i32 = arith.constant 8 : i32
    %67 = tpu.dynamic_rotate %24 by %c8_i32 dim 1 : vector<8x128xf32>, i32 -> vector<8x128xf32>
    %68 = arith.mulf %67, %29 : vector<8x128xf32>
    %69 = arith.addf %62, %68 : vector<8x128xf32>
    %70 = arith.select %45, %67, %24 : vector<8x128xi1>, vector<8x128xf32>
    %71 = arith.maximumf %64, %70 : vector<8x128xf32>
    %cst_39 = arith.constant 0.000000e+00 : f32
    %72 = vector.broadcast %cst_39 : f32 to vector<8x128xf32>
    %73 = arith.maximumf %68, %72 : vector<8x128xf32>
    %c7_i32 = arith.constant 7 : i32
    %74 = tpu.dynamic_rotate %24 by %c7_i32 dim 1 : vector<8x128xf32>, i32 -> vector<8x128xf32>
    %75 = arith.mulf %74, %31 : vector<8x128xf32>
    %76 = arith.addf %69, %75 : vector<8x128xf32>
    %77 = arith.select %47, %74, %24 : vector<8x128xi1>, vector<8x128xf32>
    %78 = arith.maximumf %71, %77 : vector<8x128xf32>
    %cst_40 = arith.constant 0.000000e+00 : f32
    %79 = vector.broadcast %cst_40 : f32 to vector<8x128xf32>
    %80 = arith.maximumf %75, %79 : vector<8x128xf32>
    %c1_i32 = arith.constant 1 : i32
    %81 = tpu.dynamic_rotate %24 by %c1_i32 dim 1 : vector<8x128xf32>, i32 -> vector<8x128xf32>
    %82 = arith.mulf %81, %33 : vector<8x128xf32>
    %83 = arith.addf %76, %82 : vector<8x128xf32>
    %84 = arith.select %49, %81, %24 : vector<8x128xi1>, vector<8x128xf32>
    %85 = arith.maximumf %78, %84 : vector<8x128xf32>
    %cst_41 = arith.constant 0.000000e+00 : f32
    %86 = vector.broadcast %cst_41 : f32 to vector<8x128xf32>
    %87 = arith.maximumf %82, %86 : vector<8x128xf32>
    %c127_i32 = arith.constant 127 : i32
    %88 = tpu.dynamic_rotate %24 by %c127_i32 dim 1 : vector<8x128xf32>, i32 -> vector<8x128xf32>
    %89 = arith.mulf %88, %35 : vector<8x128xf32>
    %90 = arith.addf %83, %89 : vector<8x128xf32>
    %91 = arith.select %51, %88, %24 : vector<8x128xi1>, vector<8x128xf32>
    %92 = arith.maximumf %85, %91 : vector<8x128xf32>
    %cst_42 = arith.constant 0.000000e+00 : f32
    %93 = vector.broadcast %cst_42 : f32 to vector<8x128xf32>
    %94 = arith.maximumf %89, %93 : vector<8x128xf32>
    %c121_i32 = arith.constant 121 : i32
    %95 = tpu.dynamic_rotate %24 by %c121_i32 dim 1 : vector<8x128xf32>, i32 -> vector<8x128xf32>
    %96 = arith.mulf %95, %37 : vector<8x128xf32>
    %97 = arith.addf %90, %96 : vector<8x128xf32>
    %98 = arith.select %53, %95, %24 : vector<8x128xi1>, vector<8x128xf32>
    %99 = arith.maximumf %92, %98 : vector<8x128xf32>
    %cst_43 = arith.constant 0.000000e+00 : f32
    %100 = vector.broadcast %cst_43 : f32 to vector<8x128xf32>
    %101 = arith.maximumf %96, %100 : vector<8x128xf32>
    %c120_i32 = arith.constant 120 : i32
    %102 = tpu.dynamic_rotate %24 by %c120_i32 dim 1 : vector<8x128xf32>, i32 -> vector<8x128xf32>
    %103 = arith.mulf %102, %39 : vector<8x128xf32>
    %104 = arith.addf %97, %103 : vector<8x128xf32>
    %105 = arith.select %55, %102, %24 : vector<8x128xi1>, vector<8x128xf32>
    %106 = arith.maximumf %99, %105 : vector<8x128xf32>
    %cst_44 = arith.constant 0.000000e+00 : f32
    %107 = vector.broadcast %cst_44 : f32 to vector<8x128xf32>
    %108 = arith.maximumf %103, %107 : vector<8x128xf32>
    %c119_i32 = arith.constant 119 : i32
    %109 = tpu.dynamic_rotate %24 by %c119_i32 dim 1 : vector<8x128xf32>, i32 -> vector<8x128xf32>
    %110 = arith.mulf %109, %41 : vector<8x128xf32>
    %111 = arith.addf %104, %110 : vector<8x128xf32>
    %112 = arith.select %57, %109, %24 : vector<8x128xi1>, vector<8x128xf32>
    %113 = arith.maximumf %106, %112 : vector<8x128xf32>
    %cst_45 = arith.constant 0.000000e+00 : f32
    %114 = vector.broadcast %cst_45 : f32 to vector<8x128xf32>
    %115 = arith.maximumf %110, %114 : vector<8x128xf32>
    %116 = arith.mulf %111, %25 : vector<8x128xf32>
    %cst_46 = arith.constant dense<0.000000e+00> : vector<8xf32>
    %117 = vector.multi_reduction <add>, %116, %cst_46 [1] : vector<8x128xf32> to vector<8xf32>
    %118 = vector.shape_cast %117 : vector<8xf32> to vector<8x1xf32>
    %cst_47 = arith.constant 7.812500e-03 : f32
    %119 = vector.broadcast %cst_47 : f32 to vector<8x1xf32>
    %120 = arith.mulf %118, %119 : vector<8x1xf32>
    %121 = arith.mulf %116, %116 : vector<8x128xf32>
    %cst_48 = arith.constant dense<0.000000e+00> : vector<8xf32>
    %122 = vector.multi_reduction <add>, %121, %cst_48 [1] : vector<8x128xf32> to vector<8xf32>
    %123 = vector.shape_cast %122 : vector<8xf32> to vector<8x1xf32>
    %cst_49 = arith.constant 7.812500e-03 : f32
    %124 = vector.broadcast %cst_49 : f32 to vector<8x1xf32>
    %125 = arith.mulf %123, %124 : vector<8x1xf32>
    %126 = arith.mulf %120, %120 : vector<8x1xf32>
    %127 = arith.subf %125, %126 : vector<8x1xf32>
    %cst_50 = arith.constant 0.000000e+00 : f32
    %128 = vector.broadcast %cst_50 : f32 to vector<8x1xf32>
    %129 = arith.maximumf %127, %128 : vector<8x1xf32>
    %130 = vector.broadcast %120 : vector<8x1xf32> to vector<8x128xf32>
    %131 = arith.subf %116, %130 : vector<8x128xf32>
    %cst_51 = arith.constant 9.99999974E-6 : f32
    %132 = vector.broadcast %cst_51 : f32 to vector<8x1xf32>
    %133 = arith.addf %129, %132 : vector<8x1xf32>
    %134 = math.rsqrt %133 : vector<8x1xf32>
    %135 = vector.broadcast %134 : vector<8x1xf32> to vector<8x128xf32>
    %136 = arith.mulf %131, %135 : vector<8x128xf32>
    %cst_52 = arith.constant dense<0.000000e+00> : vector<8xf32>
    %137 = vector.multi_reduction <add>, %113, %cst_52 [1] : vector<8x128xf32> to vector<8xf32>
    %138 = vector.shape_cast %137 : vector<8xf32> to vector<8x1xf32>
    %cst_53 = arith.constant 7.812500e-03 : f32
    %139 = vector.broadcast %cst_53 : f32 to vector<8x1xf32>
    %140 = arith.mulf %138, %139 : vector<8x1xf32>
    %141 = arith.mulf %113, %113 : vector<8x128xf32>
    %cst_54 = arith.constant dense<0.000000e+00> : vector<8xf32>
    %142 = vector.multi_reduction <add>, %141, %cst_54 [1] : vector<8x128xf32> to vector<8xf32>
    %143 = vector.shape_cast %142 : vector<8xf32> to vector<8x1xf32>
    %cst_55 = arith.constant 7.812500e-03 : f32
    %144 = vector.broadcast %cst_55 : f32 to vector<8x1xf32>
    %145 = arith.mulf %143, %144 : vector<8x1xf32>
    %146 = arith.mulf %140, %140 : vector<8x1xf32>
    %147 = arith.subf %145, %146 : vector<8x1xf32>
    %cst_56 = arith.constant 0.000000e+00 : f32
    %148 = vector.broadcast %cst_56 : f32 to vector<8x1xf32>
    %149 = arith.maximumf %147, %148 : vector<8x1xf32>
    %150 = vector.broadcast %140 : vector<8x1xf32> to vector<8x128xf32>
    %151 = arith.subf %113, %150 : vector<8x128xf32>
    %cst_57 = arith.constant 9.99999974E-6 : f32
    %152 = vector.broadcast %cst_57 : f32 to vector<8x1xf32>
    %153 = arith.addf %149, %152 : vector<8x1xf32>
    %154 = math.rsqrt %153 : vector<8x1xf32>
    %155 = vector.broadcast %154 : vector<8x1xf32> to vector<8x128xf32>
    %156 = arith.mulf %151, %155 : vector<8x128xf32>
    %157 = tpu.concatenate %66, %73, %80, %87, %59, %94, %101, %108, %115 in 0 : vector<8x128xf32>, vector<8x128xf32>, vector<8x128xf32>, vector<8x128xf32>, vector<8x128xf32>, vector<8x128xf32>, vector<8x128xf32>, vector<8x128xf32>, vector<8x128xf32> -> vector<72x128xf32>
    %c0_58 = arith.constant 0 : index
    %c0_59 = arith.constant 0 : index
    %158 = vector.load %arg3[%c0_58, %c0_59] : memref<48x72xf32, #tpu.memory_space<vmem>>, vector<24x72xf32>
    %cst_60 = arith.constant dense<0.000000e+00> : vector<24x128xf32>
    %159 = tpu.matmul %158, %157, %cst_60 {dimension_numbers = #tpu.dot_dimension_numbers<[1], [0], [0], [1], [0, 0, 1, 1], [], []>} : vector<24x72xf32>, vector<72x128xf32>, vector<24x128xf32> -> vector<24x128xf32>
    %cst_61 = arith.constant dense<0.000000e+00> : vector<24xf32>
    %160 = vector.multi_reduction <add>, %159, %cst_61 [1] : vector<24x128xf32> to vector<24xf32>
    %161 = vector.shape_cast %160 : vector<24xf32> to vector<24x1xf32>
    %cst_62 = arith.constant 7.812500e-03 : f32
    %162 = vector.broadcast %cst_62 : f32 to vector<24x1xf32>
    %163 = arith.mulf %161, %162 : vector<24x1xf32>
    %164 = arith.mulf %159, %159 : vector<24x128xf32>
    %cst_63 = arith.constant dense<0.000000e+00> : vector<24xf32>
    %165 = vector.multi_reduction <add>, %164, %cst_63 [1] : vector<24x128xf32> to vector<24xf32>
    %166 = vector.shape_cast %165 : vector<24xf32> to vector<24x1xf32>
    %cst_64 = arith.constant 7.812500e-03 : f32
    %167 = vector.broadcast %cst_64 : f32 to vector<24x1xf32>
    %168 = arith.mulf %166, %167 : vector<24x1xf32>
    %169 = arith.mulf %163, %163 : vector<24x1xf32>
    %170 = arith.subf %168, %169 : vector<24x1xf32>
    %cst_65 = arith.constant 0.000000e+00 : f32
    %171 = vector.broadcast %cst_65 : f32 to vector<24x1xf32>
    %172 = arith.maximumf %170, %171 : vector<24x1xf32>
    %173 = vector.broadcast %163 : vector<24x1xf32> to vector<24x128xf32>
    %174 = arith.subf %159, %173 : vector<24x128xf32>
    %cst_66 = arith.constant 9.99999974E-6 : f32
    %175 = vector.broadcast %cst_66 : f32 to vector<24x1xf32>
    %176 = arith.addf %172, %175 : vector<24x1xf32>
    %177 = math.rsqrt %176 : vector<24x1xf32>
    %178 = vector.broadcast %177 : vector<24x1xf32> to vector<24x128xf32>
    %179 = arith.mulf %174, %178 : vector<24x128xf32>
    %c0_67 = arith.constant 0 : index
    %c1_68 = arith.constant 1 : index
    %180 = memref.load %arg0[%c0_67, %c1_68] : memref<6x5xf32, #tpu.memory_space<smem>>
    %181 = vector.broadcast %180 : f32 to vector<8x128xf32>
    %182 = arith.mulf %181, %24 : vector<8x128xf32>
    %c0_69 = arith.constant 0 : index
    %c2_70 = arith.constant 2 : index
    %183 = memref.load %arg0[%c0_69, %c2_70] : memref<6x5xf32, #tpu.memory_space<smem>>
    %184 = vector.broadcast %183 : f32 to vector<8x128xf32>
    %185 = arith.mulf %184, %136 : vector<8x128xf32>
    %186 = arith.addf %182, %185 : vector<8x128xf32>
    %c0_71 = arith.constant 0 : index
    %c3_72 = arith.constant 3 : index
    %187 = memref.load %arg0[%c0_71, %c3_72] : memref<6x5xf32, #tpu.memory_space<smem>>
    %188 = vector.broadcast %187 : f32 to vector<8x128xf32>
    %189 = arith.mulf %188, %156 : vector<8x128xf32>
    %190 = arith.addf %186, %189 : vector<8x128xf32>
    %c0_73 = arith.constant 0 : index
    %c4 = arith.constant 4 : index
    %191 = memref.load %arg0[%c0_73, %c4] : memref<6x5xf32, #tpu.memory_space<smem>>
    %192 = vector.extract_strided_slice %179 {offsets = [0, 0], sizes = [8, 128], strides = [1, 1]} : vector<24x128xf32> to vector<8x128xf32>
    %193 = vector.broadcast %191 : f32 to vector<8x128xf32>
    %194 = arith.mulf %193, %192 : vector<8x128xf32>
    %195 = arith.addf %190, %194 : vector<8x128xf32>
    %c1_74 = arith.constant 1 : index
    %c1_75 = arith.constant 1 : index
    %196 = memref.load %arg0[%c1_74, %c1_75] : memref<6x5xf32, #tpu.memory_space<smem>>
    %197 = vector.broadcast %196 : f32 to vector<8x128xf32>
    %198 = arith.mulf %197, %24 : vector<8x128xf32>
    %c1_76 = arith.constant 1 : index
    %c2_77 = arith.constant 2 : index
    %199 = memref.load %arg0[%c1_76, %c2_77] : memref<6x5xf32, #tpu.memory_space<smem>>
    %200 = vector.broadcast %199 : f32 to vector<8x128xf32>
    %201 = arith.mulf %200, %136 : vector<8x128xf32>
    %202 = arith.addf %198, %201 : vector<8x128xf32>
    %c1_78 = arith.constant 1 : index
    %c3_79 = arith.constant 3 : index
    %203 = memref.load %arg0[%c1_78, %c3_79] : memref<6x5xf32, #tpu.memory_space<smem>>
    %204 = vector.broadcast %203 : f32 to vector<8x128xf32>
    %205 = arith.mulf %204, %156 : vector<8x128xf32>
    %206 = arith.addf %202, %205 : vector<8x128xf32>
    %c1_80 = arith.constant 1 : index
    %c4_81 = arith.constant 4 : index
    %207 = memref.load %arg0[%c1_80, %c4_81] : memref<6x5xf32, #tpu.memory_space<smem>>
    %208 = vector.extract_strided_slice %179 {offsets = [8, 0], sizes = [8, 128], strides = [1, 1]} : vector<24x128xf32> to vector<8x128xf32>
    %209 = vector.broadcast %207 : f32 to vector<8x128xf32>
    %210 = arith.mulf %209, %208 : vector<8x128xf32>
    %211 = arith.addf %206, %210 : vector<8x128xf32>
    %c3_82 = arith.constant 3 : index
    %c1_83 = arith.constant 1 : index
    %212 = memref.load %arg0[%c3_82, %c1_83] : memref<6x5xf32, #tpu.memory_space<smem>>
    %213 = vector.broadcast %212 : f32 to vector<8x128xf32>
    %214 = arith.mulf %213, %24 : vector<8x128xf32>
    %c3_84 = arith.constant 3 : index
    %c2_85 = arith.constant 2 : index
    %215 = memref.load %arg0[%c3_84, %c2_85] : memref<6x5xf32, #tpu.memory_space<smem>>
    %216 = vector.broadcast %215 : f32 to vector<8x128xf32>
    %217 = arith.mulf %216, %136 : vector<8x128xf32>
    %218 = arith.addf %214, %217 : vector<8x128xf32>
    %c3_86 = arith.constant 3 : index
    %c3_87 = arith.constant 3 : index
    %219 = memref.load %arg0[%c3_86, %c3_87] : memref<6x5xf32, #tpu.memory_space<smem>>
    %220 = vector.broadcast %219 : f32 to vector<8x128xf32>
    %221 = arith.mulf %220, %156 : vector<8x128xf32>
    %222 = arith.addf %218, %221 : vector<8x128xf32>
    %c3_88 = arith.constant 3 : index
    %c4_89 = arith.constant 4 : index
    %223 = memref.load %arg0[%c3_88, %c4_89] : memref<6x5xf32, #tpu.memory_space<smem>>
    %224 = vector.extract_strided_slice %179 {offsets = [16, 0], sizes = [8, 128], strides = [1, 1]} : vector<24x128xf32> to vector<8x128xf32>
    %225 = vector.broadcast %223 : f32 to vector<8x128xf32>
    %226 = arith.mulf %225, %224 : vector<8x128xf32>
    %227 = arith.addf %222, %226 : vector<8x128xf32>
    %cst_90 = arith.constant 0.000000e+00 : f32
    %228 = vector.broadcast %cst_90 : f32 to vector<8x128xf32>
    %229 = arith.maximumf %195, %228 : vector<8x128xf32>
    %c9_i32_91 = arith.constant 9 : i32
    %230 = tpu.dynamic_rotate %195 by %c9_i32_91 dim 1 : vector<8x128xf32>, i32 -> vector<8x128xf32>
    %231 = arith.mulf %230, %27 : vector<8x128xf32>
    %232 = arith.addf %195, %231 : vector<8x128xf32>
    %233 = arith.select %43, %230, %195 : vector<8x128xi1>, vector<8x128xf32>
    %234 = arith.maximumf %195, %233 : vector<8x128xf32>
    %cst_92 = arith.constant 0.000000e+00 : f32
    %235 = vector.broadcast %cst_92 : f32 to vector<8x128xf32>
    %236 = arith.maximumf %231, %235 : vector<8x128xf32>
    %c8_i32_93 = arith.constant 8 : i32
    %237 = tpu.dynamic_rotate %195 by %c8_i32_93 dim 1 : vector<8x128xf32>, i32 -> vector<8x128xf32>
    %238 = arith.mulf %237, %29 : vector<8x128xf32>
    %239 = arith.addf %232, %238 : vector<8x128xf32>
    %240 = arith.select %45, %237, %195 : vector<8x128xi1>, vector<8x128xf32>
    %241 = arith.maximumf %234, %240 : vector<8x128xf32>
    %cst_94 = arith.constant 0.000000e+00 : f32
    %242 = vector.broadcast %cst_94 : f32 to vector<8x128xf32>
    %243 = arith.maximumf %238, %242 : vector<8x128xf32>
    %c7_i32_95 = arith.constant 7 : i32
    %244 = tpu.dynamic_rotate %195 by %c7_i32_95 dim 1 : vector<8x128xf32>, i32 -> vector<8x128xf32>
    %245 = arith.mulf %244, %31 : vector<8x128xf32>
    %246 = arith.addf %239, %245 : vector<8x128xf32>
    %247 = arith.select %47, %244, %195 : vector<8x128xi1>, vector<8x128xf32>
    %248 = arith.maximumf %241, %247 : vector<8x128xf32>
    %cst_96 = arith.constant 0.000000e+00 : f32
    %249 = vector.broadcast %cst_96 : f32 to vector<8x128xf32>
    %250 = arith.maximumf %245, %249 : vector<8x128xf32>
    %c1_i32_97 = arith.constant 1 : i32
    %251 = tpu.dynamic_rotate %195 by %c1_i32_97 dim 1 : vector<8x128xf32>, i32 -> vector<8x128xf32>
    %252 = arith.mulf %251, %33 : vector<8x128xf32>
    %253 = arith.addf %246, %252 : vector<8x128xf32>
    %254 = arith.select %49, %251, %195 : vector<8x128xi1>, vector<8x128xf32>
    %255 = arith.maximumf %248, %254 : vector<8x128xf32>
    %cst_98 = arith.constant 0.000000e+00 : f32
    %256 = vector.broadcast %cst_98 : f32 to vector<8x128xf32>
    %257 = arith.maximumf %252, %256 : vector<8x128xf32>
    %c127_i32_99 = arith.constant 127 : i32
    %258 = tpu.dynamic_rotate %195 by %c127_i32_99 dim 1 : vector<8x128xf32>, i32 -> vector<8x128xf32>
    %259 = arith.mulf %258, %35 : vector<8x128xf32>
    %260 = arith.addf %253, %259 : vector<8x128xf32>
    %261 = arith.select %51, %258, %195 : vector<8x128xi1>, vector<8x128xf32>
    %262 = arith.maximumf %255, %261 : vector<8x128xf32>
    %cst_100 = arith.constant 0.000000e+00 : f32
    %263 = vector.broadcast %cst_100 : f32 to vector<8x128xf32>
    %264 = arith.maximumf %259, %263 : vector<8x128xf32>
    %c121_i32_101 = arith.constant 121 : i32
    %265 = tpu.dynamic_rotate %195 by %c121_i32_101 dim 1 : vector<8x128xf32>, i32 -> vector<8x128xf32>
    %266 = arith.mulf %265, %37 : vector<8x128xf32>
    %267 = arith.addf %260, %266 : vector<8x128xf32>
    %268 = arith.select %53, %265, %195 : vector<8x128xi1>, vector<8x128xf32>
    %269 = arith.maximumf %262, %268 : vector<8x128xf32>
    %cst_102 = arith.constant 0.000000e+00 : f32
    %270 = vector.broadcast %cst_102 : f32 to vector<8x128xf32>
    %271 = arith.maximumf %266, %270 : vector<8x128xf32>
    %c120_i32_103 = arith.constant 120 : i32
    %272 = tpu.dynamic_rotate %195 by %c120_i32_103 dim 1 : vector<8x128xf32>, i32 -> vector<8x128xf32>
    %273 = arith.mulf %272, %39 : vector<8x128xf32>
    %274 = arith.addf %267, %273 : vector<8x128xf32>
    %275 = arith.select %55, %272, %195 : vector<8x128xi1>, vector<8x128xf32>
    %276 = arith.maximumf %269, %275 : vector<8x128xf32>
    %cst_104 = arith.constant 0.000000e+00 : f32
    %277 = vector.broadcast %cst_104 : f32 to vector<8x128xf32>
    %278 = arith.maximumf %273, %277 : vector<8x128xf32>
    %c119_i32_105 = arith.constant 119 : i32
    %279 = tpu.dynamic_rotate %195 by %c119_i32_105 dim 1 : vector<8x128xf32>, i32 -> vector<8x128xf32>
    %280 = arith.mulf %279, %41 : vector<8x128xf32>
    %281 = arith.addf %274, %280 : vector<8x128xf32>
    %282 = arith.select %57, %279, %195 : vector<8x128xi1>, vector<8x128xf32>
    %283 = arith.maximumf %276, %282 : vector<8x128xf32>
    %cst_106 = arith.constant 0.000000e+00 : f32
    %284 = vector.broadcast %cst_106 : f32 to vector<8x128xf32>
    %285 = arith.maximumf %280, %284 : vector<8x128xf32>
    %286 = arith.mulf %281, %25 : vector<8x128xf32>
    %cst_107 = arith.constant dense<0.000000e+00> : vector<8xf32>
    %287 = vector.multi_reduction <add>, %286, %cst_107 [1] : vector<8x128xf32> to vector<8xf32>
    %288 = vector.shape_cast %287 : vector<8xf32> to vector<8x1xf32>
    %cst_108 = arith.constant 7.812500e-03 : f32
    %289 = vector.broadcast %cst_108 : f32 to vector<8x1xf32>
    %290 = arith.mulf %288, %289 : vector<8x1xf32>
    %291 = arith.mulf %286, %286 : vector<8x128xf32>
    %cst_109 = arith.constant dense<0.000000e+00> : vector<8xf32>
    %292 = vector.multi_reduction <add>, %291, %cst_109 [1] : vector<8x128xf32> to vector<8xf32>
    %293 = vector.shape_cast %292 : vector<8xf32> to vector<8x1xf32>
    %cst_110 = arith.constant 7.812500e-03 : f32
    %294 = vector.broadcast %cst_110 : f32 to vector<8x1xf32>
    %295 = arith.mulf %293, %294 : vector<8x1xf32>
    %296 = arith.mulf %290, %290 : vector<8x1xf32>
    %297 = arith.subf %295, %296 : vector<8x1xf32>
    %cst_111 = arith.constant 0.000000e+00 : f32
    %298 = vector.broadcast %cst_111 : f32 to vector<8x1xf32>
    %299 = arith.maximumf %297, %298 : vector<8x1xf32>
    %300 = vector.broadcast %290 : vector<8x1xf32> to vector<8x128xf32>
    %301 = arith.subf %286, %300 : vector<8x128xf32>
    %cst_112 = arith.constant 9.99999974E-6 : f32
    %302 = vector.broadcast %cst_112 : f32 to vector<8x1xf32>
    %303 = arith.addf %299, %302 : vector<8x1xf32>
    %304 = math.rsqrt %303 : vector<8x1xf32>
    %305 = vector.broadcast %304 : vector<8x1xf32> to vector<8x128xf32>
    %306 = arith.mulf %301, %305 : vector<8x128xf32>
    %cst_113 = arith.constant dense<0.000000e+00> : vector<8xf32>
    %307 = vector.multi_reduction <add>, %283, %cst_113 [1] : vector<8x128xf32> to vector<8xf32>
    %308 = vector.shape_cast %307 : vector<8xf32> to vector<8x1xf32>
    %cst_114 = arith.constant 7.812500e-03 : f32
    %309 = vector.broadcast %cst_114 : f32 to vector<8x1xf32>
    %310 = arith.mulf %308, %309 : vector<8x1xf32>
    %311 = arith.mulf %283, %283 : vector<8x128xf32>
    %cst_115 = arith.constant dense<0.000000e+00> : vector<8xf32>
    %312 = vector.multi_reduction <add>, %311, %cst_115 [1] : vector<8x128xf32> to vector<8xf32>
    %313 = vector.shape_cast %312 : vector<8xf32> to vector<8x1xf32>
    %cst_116 = arith.constant 7.812500e-03 : f32
    %314 = vector.broadcast %cst_116 : f32 to vector<8x1xf32>
    %315 = arith.mulf %313, %314 : vector<8x1xf32>
    %316 = arith.mulf %310, %310 : vector<8x1xf32>
    %317 = arith.subf %315, %316 : vector<8x1xf32>
    %cst_117 = arith.constant 0.000000e+00 : f32
    %318 = vector.broadcast %cst_117 : f32 to vector<8x1xf32>
    %319 = arith.maximumf %317, %318 : vector<8x1xf32>
    %320 = vector.broadcast %310 : vector<8x1xf32> to vector<8x128xf32>
    %321 = arith.subf %283, %320 : vector<8x128xf32>
    %cst_118 = arith.constant 9.99999974E-6 : f32
    %322 = vector.broadcast %cst_118 : f32 to vector<8x1xf32>
    %323 = arith.addf %319, %322 : vector<8x1xf32>
    %324 = math.rsqrt %323 : vector<8x1xf32>
    %325 = vector.broadcast %324 : vector<8x1xf32> to vector<8x128xf32>
    %326 = arith.mulf %321, %325 : vector<8x128xf32>
    %327 = tpu.concatenate %236, %243, %250, %257, %229, %264, %271, %278, %285 in 0 : vector<8x128xf32>, vector<8x128xf32>, vector<8x128xf32>, vector<8x128xf32>, vector<8x128xf32>, vector<8x128xf32>, vector<8x128xf32>, vector<8x128xf32>, vector<8x128xf32> -> vector<72x128xf32>
    %c24 = arith.constant 24 : index
    %c0_119 = arith.constant 0 : index
    %328 = vector.load %arg3[%c24, %c0_119] : memref<48x72xf32, #tpu.memory_space<vmem>>, vector<16x72xf32>
    %cst_120 = arith.constant dense<0.000000e+00> : vector<16x128xf32>
    %329 = tpu.matmul %328, %327, %cst_120 {dimension_numbers = #tpu.dot_dimension_numbers<[1], [0], [0], [1], [0, 0, 1, 1], [], []>} : vector<16x72xf32>, vector<72x128xf32>, vector<16x128xf32> -> vector<16x128xf32>
    %cst_121 = arith.constant dense<0.000000e+00> : vector<16xf32>
    %330 = vector.multi_reduction <add>, %329, %cst_121 [1] : vector<16x128xf32> to vector<16xf32>
    %331 = vector.shape_cast %330 : vector<16xf32> to vector<16x1xf32>
    %cst_122 = arith.constant 7.812500e-03 : f32
    %332 = vector.broadcast %cst_122 : f32 to vector<16x1xf32>
    %333 = arith.mulf %331, %332 : vector<16x1xf32>
    %334 = arith.mulf %329, %329 : vector<16x128xf32>
    %cst_123 = arith.constant dense<0.000000e+00> : vector<16xf32>
    %335 = vector.multi_reduction <add>, %334, %cst_123 [1] : vector<16x128xf32> to vector<16xf32>
    %336 = vector.shape_cast %335 : vector<16xf32> to vector<16x1xf32>
    %cst_124 = arith.constant 7.812500e-03 : f32
    %337 = vector.broadcast %cst_124 : f32 to vector<16x1xf32>
    %338 = arith.mulf %336, %337 : vector<16x1xf32>
    %339 = arith.mulf %333, %333 : vector<16x1xf32>
    %340 = arith.subf %338, %339 : vector<16x1xf32>
    %cst_125 = arith.constant 0.000000e+00 : f32
    %341 = vector.broadcast %cst_125 : f32 to vector<16x1xf32>
    %342 = arith.maximumf %340, %341 : vector<16x1xf32>
    %343 = vector.broadcast %333 : vector<16x1xf32> to vector<16x128xf32>
    %344 = arith.subf %329, %343 : vector<16x128xf32>
    %cst_126 = arith.constant 9.99999974E-6 : f32
    %345 = vector.broadcast %cst_126 : f32 to vector<16x1xf32>
    %346 = arith.addf %342, %345 : vector<16x1xf32>
    %347 = math.rsqrt %346 : vector<16x1xf32>
    %348 = vector.broadcast %347 : vector<16x1xf32> to vector<16x128xf32>
    %349 = arith.mulf %344, %348 : vector<16x128xf32>
    %c2_127 = arith.constant 2 : index
    %c1_128 = arith.constant 1 : index
    %350 = memref.load %arg0[%c2_127, %c1_128] : memref<6x5xf32, #tpu.memory_space<smem>>
    %351 = vector.broadcast %350 : f32 to vector<8x128xf32>
    %352 = arith.mulf %351, %195 : vector<8x128xf32>
    %c2_129 = arith.constant 2 : index
    %c2_130 = arith.constant 2 : index
    %353 = memref.load %arg0[%c2_129, %c2_130] : memref<6x5xf32, #tpu.memory_space<smem>>
    %354 = vector.broadcast %353 : f32 to vector<8x128xf32>
    %355 = arith.mulf %354, %306 : vector<8x128xf32>
    %356 = arith.addf %352, %355 : vector<8x128xf32>
    %c2_131 = arith.constant 2 : index
    %c3_132 = arith.constant 3 : index
    %357 = memref.load %arg0[%c2_131, %c3_132] : memref<6x5xf32, #tpu.memory_space<smem>>
    %358 = vector.broadcast %357 : f32 to vector<8x128xf32>
    %359 = arith.mulf %358, %326 : vector<8x128xf32>
    %360 = arith.addf %356, %359 : vector<8x128xf32>
    %c2_133 = arith.constant 2 : index
    %c4_134 = arith.constant 4 : index
    %361 = memref.load %arg0[%c2_133, %c4_134] : memref<6x5xf32, #tpu.memory_space<smem>>
    %362 = vector.extract_strided_slice %349 {offsets = [0, 0], sizes = [8, 128], strides = [1, 1]} : vector<16x128xf32> to vector<8x128xf32>
    %363 = vector.broadcast %361 : f32 to vector<8x128xf32>
    %364 = arith.mulf %363, %362 : vector<8x128xf32>
    %365 = arith.addf %360, %364 : vector<8x128xf32>
    %366 = arith.addf %211, %365 : vector<8x128xf32>
    %c4_135 = arith.constant 4 : index
    %c1_136 = arith.constant 1 : index
    %367 = memref.load %arg0[%c4_135, %c1_136] : memref<6x5xf32, #tpu.memory_space<smem>>
    %368 = vector.broadcast %367 : f32 to vector<8x128xf32>
    %369 = arith.mulf %368, %195 : vector<8x128xf32>
    %c4_137 = arith.constant 4 : index
    %c2_138 = arith.constant 2 : index
    %370 = memref.load %arg0[%c4_137, %c2_138] : memref<6x5xf32, #tpu.memory_space<smem>>
    %371 = vector.broadcast %370 : f32 to vector<8x128xf32>
    %372 = arith.mulf %371, %306 : vector<8x128xf32>
    %373 = arith.addf %369, %372 : vector<8x128xf32>
    %c4_139 = arith.constant 4 : index
    %c3_140 = arith.constant 3 : index
    %374 = memref.load %arg0[%c4_139, %c3_140] : memref<6x5xf32, #tpu.memory_space<smem>>
    %375 = vector.broadcast %374 : f32 to vector<8x128xf32>
    %376 = arith.mulf %375, %326 : vector<8x128xf32>
    %377 = arith.addf %373, %376 : vector<8x128xf32>
    %c4_141 = arith.constant 4 : index
    %c4_142 = arith.constant 4 : index
    %378 = memref.load %arg0[%c4_141, %c4_142] : memref<6x5xf32, #tpu.memory_space<smem>>
    %379 = vector.extract_strided_slice %349 {offsets = [8, 0], sizes = [8, 128], strides = [1, 1]} : vector<16x128xf32> to vector<8x128xf32>
    %380 = vector.broadcast %378 : f32 to vector<8x128xf32>
    %381 = arith.mulf %380, %379 : vector<8x128xf32>
    %382 = arith.addf %377, %381 : vector<8x128xf32>
    %383 = arith.addf %227, %382 : vector<8x128xf32>
    %cst_143 = arith.constant 0.000000e+00 : f32
    %384 = vector.broadcast %cst_143 : f32 to vector<8x128xf32>
    %385 = arith.maximumf %366, %384 : vector<8x128xf32>
    %c9_i32_144 = arith.constant 9 : i32
    %386 = tpu.dynamic_rotate %366 by %c9_i32_144 dim 1 : vector<8x128xf32>, i32 -> vector<8x128xf32>
    %387 = arith.mulf %386, %27 : vector<8x128xf32>
    %388 = arith.addf %366, %387 : vector<8x128xf32>
    %389 = arith.select %43, %386, %366 : vector<8x128xi1>, vector<8x128xf32>
    %390 = arith.maximumf %366, %389 : vector<8x128xf32>
    %cst_145 = arith.constant 0.000000e+00 : f32
    %391 = vector.broadcast %cst_145 : f32 to vector<8x128xf32>
    %392 = arith.maximumf %387, %391 : vector<8x128xf32>
    %c8_i32_146 = arith.constant 8 : i32
    %393 = tpu.dynamic_rotate %366 by %c8_i32_146 dim 1 : vector<8x128xf32>, i32 -> vector<8x128xf32>
    %394 = arith.mulf %393, %29 : vector<8x128xf32>
    %395 = arith.addf %388, %394 : vector<8x128xf32>
    %396 = arith.select %45, %393, %366 : vector<8x128xi1>, vector<8x128xf32>
    %397 = arith.maximumf %390, %396 : vector<8x128xf32>
    %cst_147 = arith.constant 0.000000e+00 : f32
    %398 = vector.broadcast %cst_147 : f32 to vector<8x128xf32>
    %399 = arith.maximumf %394, %398 : vector<8x128xf32>
    %c7_i32_148 = arith.constant 7 : i32
    %400 = tpu.dynamic_rotate %366 by %c7_i32_148 dim 1 : vector<8x128xf32>, i32 -> vector<8x128xf32>
    %401 = arith.mulf %400, %31 : vector<8x128xf32>
    %402 = arith.addf %395, %401 : vector<8x128xf32>
    %403 = arith.select %47, %400, %366 : vector<8x128xi1>, vector<8x128xf32>
    %404 = arith.maximumf %397, %403 : vector<8x128xf32>
    %cst_149 = arith.constant 0.000000e+00 : f32
    %405 = vector.broadcast %cst_149 : f32 to vector<8x128xf32>
    %406 = arith.maximumf %401, %405 : vector<8x128xf32>
    %c1_i32_150 = arith.constant 1 : i32
    %407 = tpu.dynamic_rotate %366 by %c1_i32_150 dim 1 : vector<8x128xf32>, i32 -> vector<8x128xf32>
    %408 = arith.mulf %407, %33 : vector<8x128xf32>
    %409 = arith.addf %402, %408 : vector<8x128xf32>
    %410 = arith.select %49, %407, %366 : vector<8x128xi1>, vector<8x128xf32>
    %411 = arith.maximumf %404, %410 : vector<8x128xf32>
    %cst_151 = arith.constant 0.000000e+00 : f32
    %412 = vector.broadcast %cst_151 : f32 to vector<8x128xf32>
    %413 = arith.maximumf %408, %412 : vector<8x128xf32>
    %c127_i32_152 = arith.constant 127 : i32
    %414 = tpu.dynamic_rotate %366 by %c127_i32_152 dim 1 : vector<8x128xf32>, i32 -> vector<8x128xf32>
    %415 = arith.mulf %414, %35 : vector<8x128xf32>
    %416 = arith.addf %409, %415 : vector<8x128xf32>
    %417 = arith.select %51, %414, %366 : vector<8x128xi1>, vector<8x128xf32>
    %418 = arith.maximumf %411, %417 : vector<8x128xf32>
    %cst_153 = arith.constant 0.000000e+00 : f32
    %419 = vector.broadcast %cst_153 : f32 to vector<8x128xf32>
    %420 = arith.maximumf %415, %419 : vector<8x128xf32>
    %c121_i32_154 = arith.constant 121 : i32
    %421 = tpu.dynamic_rotate %366 by %c121_i32_154 dim 1 : vector<8x128xf32>, i32 -> vector<8x128xf32>
    %422 = arith.mulf %421, %37 : vector<8x128xf32>
    %423 = arith.addf %416, %422 : vector<8x128xf32>
    %424 = arith.select %53, %421, %366 : vector<8x128xi1>, vector<8x128xf32>
    %425 = arith.maximumf %418, %424 : vector<8x128xf32>
    %cst_155 = arith.constant 0.000000e+00 : f32
    %426 = vector.broadcast %cst_155 : f32 to vector<8x128xf32>
    %427 = arith.maximumf %422, %426 : vector<8x128xf32>
    %c120_i32_156 = arith.constant 120 : i32
    %428 = tpu.dynamic_rotate %366 by %c120_i32_156 dim 1 : vector<8x128xf32>, i32 -> vector<8x128xf32>
    %429 = arith.mulf %428, %39 : vector<8x128xf32>
    %430 = arith.addf %423, %429 : vector<8x128xf32>
    %431 = arith.select %55, %428, %366 : vector<8x128xi1>, vector<8x128xf32>
    %432 = arith.maximumf %425, %431 : vector<8x128xf32>
    %cst_157 = arith.constant 0.000000e+00 : f32
    %433 = vector.broadcast %cst_157 : f32 to vector<8x128xf32>
    %434 = arith.maximumf %429, %433 : vector<8x128xf32>
    %c119_i32_158 = arith.constant 119 : i32
    %435 = tpu.dynamic_rotate %366 by %c119_i32_158 dim 1 : vector<8x128xf32>, i32 -> vector<8x128xf32>
    %436 = arith.mulf %435, %41 : vector<8x128xf32>
    %437 = arith.addf %430, %436 : vector<8x128xf32>
    %438 = arith.select %57, %435, %366 : vector<8x128xi1>, vector<8x128xf32>
    %439 = arith.maximumf %432, %438 : vector<8x128xf32>
    %cst_159 = arith.constant 0.000000e+00 : f32
    %440 = vector.broadcast %cst_159 : f32 to vector<8x128xf32>
    %441 = arith.maximumf %436, %440 : vector<8x128xf32>
    %442 = arith.mulf %437, %25 : vector<8x128xf32>
    %cst_160 = arith.constant dense<0.000000e+00> : vector<8xf32>
    %443 = vector.multi_reduction <add>, %442, %cst_160 [1] : vector<8x128xf32> to vector<8xf32>
    %444 = vector.shape_cast %443 : vector<8xf32> to vector<8x1xf32>
    %cst_161 = arith.constant 7.812500e-03 : f32
    %445 = vector.broadcast %cst_161 : f32 to vector<8x1xf32>
    %446 = arith.mulf %444, %445 : vector<8x1xf32>
    %447 = arith.mulf %442, %442 : vector<8x128xf32>
    %cst_162 = arith.constant dense<0.000000e+00> : vector<8xf32>
    %448 = vector.multi_reduction <add>, %447, %cst_162 [1] : vector<8x128xf32> to vector<8xf32>
    %449 = vector.shape_cast %448 : vector<8xf32> to vector<8x1xf32>
    %cst_163 = arith.constant 7.812500e-03 : f32
    %450 = vector.broadcast %cst_163 : f32 to vector<8x1xf32>
    %451 = arith.mulf %449, %450 : vector<8x1xf32>
    %452 = arith.mulf %446, %446 : vector<8x1xf32>
    %453 = arith.subf %451, %452 : vector<8x1xf32>
    %cst_164 = arith.constant 0.000000e+00 : f32
    %454 = vector.broadcast %cst_164 : f32 to vector<8x1xf32>
    %455 = arith.maximumf %453, %454 : vector<8x1xf32>
    %456 = vector.broadcast %446 : vector<8x1xf32> to vector<8x128xf32>
    %457 = arith.subf %442, %456 : vector<8x128xf32>
    %cst_165 = arith.constant 9.99999974E-6 : f32
    %458 = vector.broadcast %cst_165 : f32 to vector<8x1xf32>
    %459 = arith.addf %455, %458 : vector<8x1xf32>
    %460 = math.rsqrt %459 : vector<8x1xf32>
    %461 = vector.broadcast %460 : vector<8x1xf32> to vector<8x128xf32>
    %462 = arith.mulf %457, %461 : vector<8x128xf32>
    %cst_166 = arith.constant dense<0.000000e+00> : vector<8xf32>
    %463 = vector.multi_reduction <add>, %439, %cst_166 [1] : vector<8x128xf32> to vector<8xf32>
    %464 = vector.shape_cast %463 : vector<8xf32> to vector<8x1xf32>
    %cst_167 = arith.constant 7.812500e-03 : f32
    %465 = vector.broadcast %cst_167 : f32 to vector<8x1xf32>
    %466 = arith.mulf %464, %465 : vector<8x1xf32>
    %467 = arith.mulf %439, %439 : vector<8x128xf32>
    %cst_168 = arith.constant dense<0.000000e+00> : vector<8xf32>
    %468 = vector.multi_reduction <add>, %467, %cst_168 [1] : vector<8x128xf32> to vector<8xf32>
    %469 = vector.shape_cast %468 : vector<8xf32> to vector<8x1xf32>
    %cst_169 = arith.constant 7.812500e-03 : f32
    %470 = vector.broadcast %cst_169 : f32 to vector<8x1xf32>
    %471 = arith.mulf %469, %470 : vector<8x1xf32>
    %472 = arith.mulf %466, %466 : vector<8x1xf32>
    %473 = arith.subf %471, %472 : vector<8x1xf32>
    %cst_170 = arith.constant 0.000000e+00 : f32
    %474 = vector.broadcast %cst_170 : f32 to vector<8x1xf32>
    %475 = arith.maximumf %473, %474 : vector<8x1xf32>
    %476 = vector.broadcast %466 : vector<8x1xf32> to vector<8x128xf32>
    %477 = arith.subf %439, %476 : vector<8x128xf32>
    %cst_171 = arith.constant 9.99999974E-6 : f32
    %478 = vector.broadcast %cst_171 : f32 to vector<8x1xf32>
    %479 = arith.addf %475, %478 : vector<8x1xf32>
    %480 = math.rsqrt %479 : vector<8x1xf32>
    %481 = vector.broadcast %480 : vector<8x1xf32> to vector<8x128xf32>
    %482 = arith.mulf %477, %481 : vector<8x128xf32>
    %483 = tpu.concatenate %392, %399, %406, %413, %385, %420, %427, %434, %441 in 0 : vector<8x128xf32>, vector<8x128xf32>, vector<8x128xf32>, vector<8x128xf32>, vector<8x128xf32>, vector<8x128xf32>, vector<8x128xf32>, vector<8x128xf32>, vector<8x128xf32> -> vector<72x128xf32>
    %c40 = arith.constant 40 : index
    %c0_172 = arith.constant 0 : index
    %484 = vector.load %arg3[%c40, %c0_172] : memref<48x72xf32, #tpu.memory_space<vmem>>, vector<8x72xf32>
    %cst_173 = arith.constant dense<0.000000e+00> : vector<8x128xf32>
    %485 = tpu.matmul %484, %483, %cst_173 {dimension_numbers = #tpu.dot_dimension_numbers<[1], [0], [0], [1], [0, 0, 1, 1], [], []>} : vector<8x72xf32>, vector<72x128xf32>, vector<8x128xf32> -> vector<8x128xf32>
    %cst_174 = arith.constant dense<0.000000e+00> : vector<8xf32>
    %486 = vector.multi_reduction <add>, %485, %cst_174 [1] : vector<8x128xf32> to vector<8xf32>
    %487 = vector.shape_cast %486 : vector<8xf32> to vector<8x1xf32>
    %cst_175 = arith.constant 7.812500e-03 : f32
    %488 = vector.broadcast %cst_175 : f32 to vector<8x1xf32>
    %489 = arith.mulf %487, %488 : vector<8x1xf32>
    %490 = arith.mulf %485, %485 : vector<8x128xf32>
    %cst_176 = arith.constant dense<0.000000e+00> : vector<8xf32>
    %491 = vector.multi_reduction <add>, %490, %cst_176 [1] : vector<8x128xf32> to vector<8xf32>
    %492 = vector.shape_cast %491 : vector<8xf32> to vector<8x1xf32>
    %cst_177 = arith.constant 7.812500e-03 : f32
    %493 = vector.broadcast %cst_177 : f32 to vector<8x1xf32>
    %494 = arith.mulf %492, %493 : vector<8x1xf32>
    %495 = arith.mulf %489, %489 : vector<8x1xf32>
    %496 = arith.subf %494, %495 : vector<8x1xf32>
    %cst_178 = arith.constant 0.000000e+00 : f32
    %497 = vector.broadcast %cst_178 : f32 to vector<8x1xf32>
    %498 = arith.maximumf %496, %497 : vector<8x1xf32>
    %499 = vector.broadcast %489 : vector<8x1xf32> to vector<8x128xf32>
    %500 = arith.subf %485, %499 : vector<8x128xf32>
    %cst_179 = arith.constant 9.99999974E-6 : f32
    %501 = vector.broadcast %cst_179 : f32 to vector<8x1xf32>
    %502 = arith.addf %498, %501 : vector<8x1xf32>
    %503 = math.rsqrt %502 : vector<8x1xf32>
    %504 = vector.broadcast %503 : vector<8x1xf32> to vector<8x128xf32>
    %505 = arith.mulf %500, %504 : vector<8x128xf32>
    %c5_180 = arith.constant 5 : index
    %c1_181 = arith.constant 1 : index
    %506 = memref.load %arg0[%c5_180, %c1_181] : memref<6x5xf32, #tpu.memory_space<smem>>
    %507 = vector.broadcast %506 : f32 to vector<8x128xf32>
    %508 = arith.mulf %507, %366 : vector<8x128xf32>
    %c5_182 = arith.constant 5 : index
    %c2_183 = arith.constant 2 : index
    %509 = memref.load %arg0[%c5_182, %c2_183] : memref<6x5xf32, #tpu.memory_space<smem>>
    %510 = vector.broadcast %509 : f32 to vector<8x128xf32>
    %511 = arith.mulf %510, %462 : vector<8x128xf32>
    %512 = arith.addf %508, %511 : vector<8x128xf32>
    %c5_184 = arith.constant 5 : index
    %c3_185 = arith.constant 3 : index
    %513 = memref.load %arg0[%c5_184, %c3_185] : memref<6x5xf32, #tpu.memory_space<smem>>
    %514 = vector.broadcast %513 : f32 to vector<8x128xf32>
    %515 = arith.mulf %514, %482 : vector<8x128xf32>
    %516 = arith.addf %512, %515 : vector<8x128xf32>
    %c5_186 = arith.constant 5 : index
    %c4_187 = arith.constant 4 : index
    %517 = memref.load %arg0[%c5_186, %c4_187] : memref<6x5xf32, #tpu.memory_space<smem>>
    %518 = vector.broadcast %517 : f32 to vector<8x128xf32>
    %519 = arith.mulf %518, %505 : vector<8x128xf32>
    %520 = arith.addf %516, %519 : vector<8x128xf32>
    %521 = arith.addf %383, %520 : vector<8x128xf32>
    %522 = tpu.concatenate %195, %366, %521 in 0 : vector<8x128xf32>, vector<8x128xf32>, vector<8x128xf32> -> vector<24x128xf32>
    %c0_188 = arith.constant 0 : index
    %c0_189 = arith.constant 0 : index
    %523 = vector.load %arg6[%c0_188, %c0_189] : memref<24x128xf32, #tpu.memory_space<vmem>>, vector<24x128xf32>
    tpu.vector_store %arg6[%c0_188, %c0_189], %522 {strides = array<i32>} : memref<24x128xf32, #tpu.memory_space<vmem>>, vector<24x128xf32>,
    return
  }
}

</mosaic_0001>

<bundles_post_ra>
// kernel: _cell_forward.1
= control target key start
LH: loop header
LB: loop body
LE: loop exit
PB: predicated region body
PF: predicated region fallthrough
CT: control target
= control target key end

     0   :  { %11 = vsyncpa [#allocation3], 0  ;;  %s1461_s0 = inlined_call_operand.vmem [shape: f32[6,5], index: 0, kind: input, shape index: {}]   ;;  %s1462_s1 = inlined_call_operand.vmem [shape: f32[8,128], index: 1, kind: input, shape index: {}]   ;;  %s1463_s2 = inlined_call_operand.vmem [shape: f32[8,8], index: 2, kind: input, shape index: {}]   ;;  %s1464_s3 = inlined_call_operand.vmem [shape: f32[48,72], index: 3, kind: input, shape index: {}]   ;;  %s1465_s4 = inlined_call_operand.vmem [shape: f32[9,8,128], index: 4, kind: input, shape index: {}]   ;;  %s1466_s5 = inlined_call_operand.vmem [shape: f32[8,128], index: 5, kind: input, shape index: {}]   ;;  %s1467_s6 = inlined_call_operand.vmem [shape: f32[24,128], index: 6, kind: output, shape index: {}]  }
   0x1   :  { %s18_s23 = sshll.u32 %s1461_s0, 4  ;;  %s19_s23 = int_to_ptr.vmem [resolvable:$true] %s18_s23 }
   0x2   :  { %s1069_s24 = scalar_lea.vmem %s19_s23, 128  ;;  %p1074_p1 = scmp.lt.s32.totalorder %s19_s23, %s19_s23 }
   0x3   :  { %p1070_p0 = scmp.ne.s32.totalorder %s19_s23, %s1069_s24  ;;  %p1075_p2 = scmp.lt.s32.totalorder %s1069_s24, %s1069_s24 }
   0x5   :  { %p1076_p3 = por %p1075_p2, %p1074_p1 }
   0x7   :  { %p1077_p4 = pnand %p1076_p3, %p1070_p0 }
   0x9   :  { %1080 = shalt.err (!%p1077_p4)
}
   0xa   :  { %s1083_s25 = smov [#allocation2]  }
   0xb   :  { %21 = dma.vmem_to_smem %s19_s23, 128, %s1083_s25, [#allocation3]  }
   0xc   :  { %1081 = dma.done.wait [#allocation3], 128  }
   0xd   :  { %1082 = vsyncadd [#allocation3], 4294967168 }
   0xe   :  { %35 = sfence }
   0xf   :  { %v37_v0 = vld [vmem:[%s1462_s1] sm:$0xff]  ;;  %v1084_v1 = vmov 0.0   ;;  %vm1085_vm0 = vmmov 0   ;;  %vm39_vm1 = vcmask 64512   ;;  %v1086_v16 = vmov 0.0|0.0   ;;  %s1087_s1 = smov 7  }
  0x10   :  { %917 = vmatprep.subr.mxu0 %v1084_v1  ;;  %v38_v2 = vmax.f32 %v37_v0, 0.0  ;;  %919 = vmatprep.mubr.msk.f32.mxu0 %vm1085_vm0, %v1084_v1  ;;  %v36_v3 = vld [vmem:[%s1463_s2] sm:$0xff]  ;;  %s1088_s2 = smov 9   ;;  %s1089_s29 = smov 8   ;;  %v1171_v21 = vld [vmem:[%s1465_s4 + $0x8] sm:$0xff]  ;;  %v1178_v23 = vld [vmem:[%s1465_s4 + $0x10] sm:$0xff] }
  0x11   :  { %940 = vmatprep.mubr.msk.f32.mxu1 %vm1085_vm0, %v1084_v1  ;;  %991 = vmatprep.subr.bf16.mxu1 %v1086_v16  ;;  %s1090_s30 = smov 1   ;;  %s1091_s7 = smov 127   ;;  %v1166_v19 = vld [vmem:[%s1465_s4] sm:$0xff]  ;;  %vm144_vm3 = vcmp.gt.f32.partialorder %v1171_v21, 0.0  ;;  %v1188_v28 = vld [vmem:[%s1465_s4 + $0x18] sm:$0xff]  ;;  %vm145_vm4 = vcmp.gt.f32.partialorder %v1178_v23, 0.0 }
  0x12   :  { %918 = vmatpush3.msra.mxu0 %v38_v2  ;;  %s1092_s8 = smov 121   ;;  %s1093_s9 = smov 120   ;;  %vm143_vm2 = vcmp.gt.f32.partialorder %v1166_v19, 0.0  ;;  %v1201_v39 = vld [vmem:[%s1465_s4 + $0x28] sm:$0xff]  ;;  %vm146_vm5 = vcmp.gt.f32.partialorder %v1188_v28, 0.0  ;;  %v1212_v47 = vld [vmem:[%s1465_s4 + $0x30] sm:$0xff] }
  0x13   :  { %920 = vmatmul.mubr.msk.f32.vlgmr.msra.gmra.mrb[0].mxu0 %vm39_vm1, %v36_v3  ;;  %s1094_s10 = smov 119   ;;  %vm147_vm6 = vcmp.gt.f32.partialorder %v1201_v39, 0.0  ;;  %v1222_v53 = vld [vmem:[%s1465_s4 + $0x38] sm:$0xff]  ;;  %vm148_vm7 = vcmp.gt.f32.partialorder %v1212_v47, 0.0  ;;  %v1237_v61 = vld [vmem:[%s1465_s4 + $0x40] sm:$0xff]  ;;  %vm240_vm10 = vcmask 588800  }
  0x14   :  { %vm149_vm8 = vcmp.gt.f32.partialorder %v1222_v53, 0.0  ;;  %vm150_vm9 = vcmp.gt.f32.partialorder %v1237_v61, 0.0  ;;  %s859_s12 = sld [smem:[#allocation2 + $0x81]]  ;;  %s860_s14 = sld [smem:[#allocation2 + $0x82]] }
  0x15   :  { %s863_s13 = sld [smem:[#allocation2 + $0x181]]  ;;  %s864_s15 = sld [smem:[#allocation2 + $0x182]] }
  0x16   :  { %s861_s16 = sld [smem:[#allocation2 + $0x83]]  ;;  %s856_s18 = sld [smem:[#allocation2 + $0x2]] }
  0x17   :  { %s865_s17 = sld [smem:[#allocation2 + $0x183]]  ;;  %s855_s19 = sld [smem:[#allocation2 + $0x1]] }
  0x18   :  { %s857_s20 = sld [smem:[#allocation2 + $0x3]]  ;;  %s858_s21 = sld [smem:[#allocation2 + $0x4]] }
  0x19   :  { %s873_s28 = sld [smem:[#allocation2 + $0x201]]  ;;  %s875_s11 = sld [smem:[#allocation2 + $0x203]] }
  0xe6   :  { %v109_v4 = vpop.f32.mrb[0].mxu0 }
  0xe7   :  { %113 = vadd.xlane.f32.xlu0 %v109_v4  ;;  %v921_v5 = vpop.f32.mrb[1].mxu0  ;;  %v116_v6 = vmul.f32 %v109_v4, %v109_v4 }
  0xeb   :  { %117 = vadd.xlane.f32.xlu0 %v116_v6 }
 0x174   :  { %v114_v7 = vpop.xlane.xlu0 %113 }
 0x175   :  { %v115_v8 = vmul.f32 0.0078125, %v114_v7 }
 0x177   :  { %v120_v10 = vmul.f32 %v115_v8, %v115_v8  ;;  %v123_v15 = vsub.f32 %v109_v4, %v115_v8 }
 0x178   :  { %v118_v9 = vpop.xlane.xlu0 %117 }
 0x179   :  { %v119_v11 = vmul.f32 0.0078125, %v118_v9 }
 0x17b   :  { %v121_v12 = vsub.f32 %v119_v11, %v120_v10 }
 0x17d   :  { %v122_v13 = vmax.f32 %v121_v12, 0.0 }
 0x17f   :  { %v124_v14 = vadd.f32 1e-05, %v122_v13 }
 0x181   :  { %1043 = vrsqrt.f32 %v124_v14 }
 0x18b   :  { %v1044_v17 = vpop.eup %1043 }
 0x18c   :  { %v1145_v18 = vmul.f32 %v1044_v17, %v123_v15  ;;  %v1252_v15 = vld [vmem:[%s1466_s5] sm:$0xff]  ;;  %s874_s5 = sld [smem:[#allocation2 + $0x202]] }
 0x18e   :  { %166 = vrot.lane.b32.xlu0 %v1145_v18, %s1087_s1  ;;  %152 = vrot.lane.b32.xlu1 %v1145_v18, %s1088_s2  ;;  %v151_v52 = vmax.f32 %v1145_v18, 0.0 }
 0x192   :  { %159 = vrot.lane.b32.xlu1 %v1145_v18, %s1089_s29 }
 0x196   :  { %173 = vrot.lane.b32.xlu1 %v1145_v18, %s1090_s30 }
 0x19a   :  { %180 = vrot.lane.b32.xlu1 %v1145_v18, %s1091_s7 }
 0x19e   :  { %187 = vrot.lane.b32.xlu1 %v1145_v18, %s1092_s8 }
 0x1a2   :  { %194 = vrot.lane.b32.xlu1 %v1145_v18, %s1093_s9 }
 0x1a6   :  { %201 = vrot.lane.b32.xlu1 %v1145_v18, %s1094_s10 }
 0x200   :  { %v153_v20 = vpop.permute.xlu1 %152  ;;  %v167_v24 = vpop.permute.xlu0 %166 }
 0x201   :  { %v154_v22 = vmul.f32 %v153_v20, %v1166_v19  ;;  %v156_v26 = vsel %vm143_vm2, %v153_v20, %v1145_v18  ;;  %v168_v29 = vmul.f32 %v1178_v23, %v167_v24  ;;  %v170_v44 = vsel %vm145_vm4, %v167_v24, %v1145_v18  ;;  %v237_v24 = vld [vmem:[%s1464_s3] sm:$0xff] }
 0x202   :  { %v157_v33 = vmax.f32 %v1145_v18, %v156_v26 }
 0x203   :  { %v158_v31 = vmax.f32 %v154_v22, 0.0  ;;  %v155_v35 = vadd.f32 %v154_v22, %v1145_v18  ;;  %v172_v40 = vmax.f32 %v168_v29, 0.0 }
 0x204   :  { %v160_v25 = vpop.permute.xlu1 %159 }
 0x205   :  { %v161_v27 = vmul.f32 %v1171_v21, %v160_v25  ;;  %v163_v30 = vsel %vm144_vm3, %v160_v25, %v1145_v18 }
 0x206   :  { %v164_v38 = vmax.f32 %v157_v33, %v163_v30 }
 0x207   :  { %v165_v32 = vmax.f32 %v161_v27, 0.0  ;;  %v162_v41 = vadd.f32 %v161_v27, %v155_v35  ;;  %v238_v27 = vld [vmem:[%s1464_s3 + $0x8] sm:$0xff] }
 0x208   :  { %v174_v34 = vpop.permute.xlu1 %173  ;;  %v171_v48 = vmax.f32 %v164_v38, %v170_v44 }
 0x209   :  { %v175_v36 = vmul.f32 %v1188_v28, %v174_v34  ;;  %v992_v37 = vpack.c.bf16 %v165_v32, %v158_v31  ;;  %v169_v49 = vadd.f32 %v168_v29, %v162_v41  ;;  %v177_v50 = vsel %vm146_vm5, %v174_v34, %v1145_v18 }
 0x20a   :  { %v178_v57 = vmax.f32 %v171_v48, %v177_v50  ;;  %v388_v48 = vstv %s859_s12  ;;  %s862_s12 = sld [smem:[#allocation2 + $0x84]] }
 0x20b   :  { %v179_v42 = vmax.f32 %v175_v36, 0.0  ;;  %993 = vmatpush3.bf16.msra.mxu1 %v992_v37  ;;  %v176_v58 = vadd.f32 %v175_v36, %v169_v49  ;;  %v403_v49 = vstv %s863_s13  ;;  %s870_s13 = sld [smem:[#allocation2 + $0x102]] }
 0x20c   :  { %v181_v43 = vpop.permute.xlu1 %180  ;;  %994 = vmatprep.subr.bf16.mxu1 %v1086_v16 }
 0x20d   :  { %v182_v45 = vmul.f32 %v1201_v39, %v181_v43  ;;  %v995_v46 = vpack.c.bf16 %v179_v42, %v172_v40  ;;  %v184_v55 = vsel %vm147_vm6, %v181_v43, %v1145_v18 }
 0x20e   :  { %v185_v62 = vmax.f32 %v178_v57, %v184_v55  ;;  %v389_v57 = vmul.f32 %v388_v48, %v1145_v18 }
 0x20f   :  { %v186_v51 = vmax.f32 %v182_v45, 0.0  ;;  %996 = vmatpush3.bf16.msra.mxu1 %v995_v46  ;;  %v183_v0 = vadd.f32 %v182_v45, %v176_v58  ;;  %v404_v58 = vmul.f32 %v403_v49, %v1145_v18 }
 0x210   :  { %v188_v54 = vpop.permute.xlu1 %187  ;;  %997 = vmatprep.subr.bf16.mxu1 %v1086_v16 }
 0x211   :  { %v998_v56 = vpack.c.bf16 %v186_v51, %v151_v52  ;;  %v189_v59 = vmul.f32 %v1212_v47, %v188_v54  ;;  %v191_v60 = vsel %vm148_vm7, %v188_v54, %v1145_v18  ;;  %v391_v51 = vstv %s860_s14  ;;  %s869_s14 = sld [smem:[#allocation2 + $0x101]] }
 0x212   :  { %v192_v4 = vmax.f32 %v185_v62, %v191_v60  ;;  %v406_v52 = vstv %s864_s15  ;;  %s871_s15 = sld [smem:[#allocation2 + $0x103]] }
 0x213   :  { %999 = vmatpush3.bf16.msra.mxu1 %v998_v56  ;;  %v190_v5 = vadd.f32 %v189_v59, %v183_v0  ;;  %v193_v6 = vmax.f32 %v189_v59, 0.0  ;;  %v395_v59 = vstv %s861_s16  ;;  %s872_s16 = sld [smem:[#allocation2 + $0x104]] }
 0x214   :  { %v195_v63 = vpop.permute.xlu1 %194  ;;  %1000 = vmatprep.subr.bf16.mxu1 %v1086_v16 }
 0x215   :  { %v196_v2 = vmul.f32 %v1222_v53, %v195_v63  ;;  %v198_v3 = vsel %vm149_vm8, %v195_v63, %v1145_v18  ;;  %v410_v63 = vstv %s865_s17 }
 0x216   :  { %v199_v8 = vmax.f32 %v192_v4, %v198_v3 }
 0x217   :  { %v200_v7 = vmax.f32 %v196_v2, 0.0  ;;  %v197_v10 = vadd.f32 %v196_v2, %v190_v5 }
 0x218   :  { %v202_v9 = vpop.permute.xlu1 %201 }
 0x219   :  { %v203_v11 = vmul.f32 %v1237_v61, %v202_v9  ;;  %v205_v12 = vsel %vm150_vm9, %v202_v9, %v1145_v18  ;;  %v1001_v13 = vpack.c.bf16 %v200_v7, %v193_v6 }
 0x21a   :  { %v206_v14 = vmax.f32 %v199_v8, %v205_v12 }
 0x21b   :  { %v204_v17 = vadd.f32 %v203_v11, %v197_v10  ;;  %1002 = vmatpush3.bf16.msra.mxu1 %v1001_v13  ;;  %v207_v20 = vmax.f32 %v203_v11, 0.0 }
 0x21c   :  { %223 = vadd.xlane.f32.xlu0 %v206_v14  ;;  %938 = vmatprep.subr.mxu1 %v1084_v1  ;;  %v226_v26 = vmul.f32 %v206_v14, %v206_v14 }
 0x21d   :  { %v208_v22 = vmul.f32 %v204_v17, %v1252_v15 }
 0x21f   :  { %209 = vadd.xlane.f32.xlu1 %v208_v22  ;;  %939 = vmatpush3.msra.mxu1 %v207_v20  ;;  %v212_v25 = vmul.f32 %v208_v22, %v208_v22 }
 0x220   :  { %941 = vmatmul.mubr.msk.f32.vlgmr.msra.gmra.mrb[0].mxu1 %vm240_vm10, %v237_v24  ;;  %1019 = vmatprep.subr.bf16.mxu1 %v1086_v16 }
 0x221   :  { %213 = vadd.xlane.f32.xlu0 %v212_v25  ;;  %943 = vmatprep.mubr.msk.f32.mxu1 %vm1085_vm0, %v1084_v1  ;;  %v376_v25 = vstv %s856_s18 }
 0x223   :  { %227 = vadd.xlane.f32.xlu1 %v226_v26  ;;  %v373_v26 = vstv %s855_s19 }
 0x224   :  { %944 = vmatmul.mubr.msk.f32.gmra.mrb[2].mxu1 %vm240_vm10, %v238_v27 }
 0x225   :  { %946 = vmatprep.mubr.msk.f32.mxu1 %vm1085_vm0, %v1084_v1 }
 0x2a9   :  { %v224_v29 = vpop.xlane.xlu0 %223 }
 0x2aa   :  { %v225_v31 = vmul.f32 0.0078125, %v224_v29  ;;  %v380_v29 = vstv %s857_s20 }
 0x2ac   :  { %v210_v30 = vpop.xlane.xlu1 %209  ;;  %v230_v37 = vmul.f32 %v225_v31, %v225_v31  ;;  %v233_v54 = vsub.f32 %v206_v14, %v225_v31 }
 0x2ad   :  { %v211_v32 = vmul.f32 0.0078125, %v210_v30  ;;  %v374_v30 = vmul.f32 %v373_v26, %v1145_v18 }
 0x2ae   :  { %v214_v33 = vpop.xlane.xlu0 %213 }
 0x2af   :  { %v216_v34 = vmul.f32 %v211_v32, %v211_v32  ;;  %v215_v35 = vmul.f32 0.0078125, %v214_v33  ;;  %v219_v46 = vsub.f32 %v208_v22, %v211_v32 }
 0x2b0   :  { %v228_v36 = vpop.xlane.xlu1 %227 }
 0x2b1   :  { %v217_v38 = vsub.f32 %v215_v35, %v216_v34  ;;  %v229_v40 = vmul.f32 0.0078125, %v228_v36  ;;  %v384_v35 = vstv %s858_s21 }
 0x2b3   :  { %v218_v41 = vmax.f32 %v217_v38, 0.0  ;;  %v231_v42 = vsub.f32 %v229_v40, %v230_v37 }
 0x2b5   :  { %v220_v43 = vadd.f32 1e-05, %v218_v41  ;;  %v232_v44 = vmax.f32 %v231_v42, 0.0  ;;  %v503_v42 = vld [vmem:[%s1464_s3 + $0x18] sm:$0xff] }
 0x2b6   :  { %967 = vmatprep.mubr.msk.f32.mxu0 %vm240_vm10, %v503_v42 }
 0x2b7   :  { %1045 = vrsqrt.f32 %v220_v43  ;;  %v234_v45 = vadd.f32 1e-05, %v232_v44 }
 0x2b9   :  { %1047 = vrsqrt.f32 %v234_v45 }
 0x2c1   :  { %v1046_v50 = vpop.eup %1045 }
 0x2c2   :  { %v222_v55 = vmul.f32 %v1046_v50, %v219_v46 }
 0x2c3   :  { %v1048_v56 = vpop.eup %1047 }
 0x2c4   :  { %v392_v60 = vmul.f32 %v391_v51, %v222_v55  ;;  %v407_v62 = vmul.f32 %v406_v52, %v222_v55  ;;  %v236_v0 = vmul.f32 %v1048_v56, %v233_v54  ;;  %v377_v27 = vmul.f32 %v376_v25, %v222_v55 }
 0x2c6   :  { %v393_v2 = vadd.f32 %v392_v60, %v389_v57  ;;  %v408_v3 = vadd.f32 %v407_v62, %v404_v58  ;;  %v396_v4 = vmul.f32 %v395_v59, %v236_v0  ;;  %v411_v5 = vmul.f32 %v410_v63, %v236_v0 }
 0x2c7   :  { %v378_v31 = vadd.f32 %v377_v27, %v374_v30  ;;  %v381_v32 = vmul.f32 %v380_v29, %v236_v0 }
 0x2c8   :  { %v1271_v6 = vadd.f32 %v396_v4, %v393_v2  ;;  %v1273_v7 = vadd.f32 %v411_v5, %v408_v3 }
 0x2c9   :  { %v382_v37 = vadd.f32 %v381_v32, %v378_v31 }
 0x2f3   :  { %v316_v8 = vpop.f32.mrb[0].mxu1 }
 0x2f4   :  { %330 = vadd.xlane.f32.xlu0 %v316_v8  ;;  %v942_v9 = vpop.f32.mrb[1].mxu1  ;;  %v339_v10 = vmul.f32 %v316_v8, %v316_v8 }
 0x2f6   :  { %342 = vadd.xlane.f32.xlu1 %v339_v10 }
 0x2f7   :  { %v1286_v18 = vpop.f32.mrb[2].mxu1 }
 0x2f8   :  { %v945_v41 = vpop.f32.mrb[3].mxu1 }
 0x381   :  { %v331_v11 = vpop.xlane.xlu0 %330 }
 0x382   :  { %v336_v12 = vmul.f32 0.0078125, %v331_v11 }
 0x383   :  { %v343_v13 = vpop.xlane.xlu1 %342 }
 0x384   :  { %v351_v14 = vmul.f32 %v336_v12, %v336_v12  ;;  %v348_v17 = vmul.f32 0.0078125, %v343_v13  ;;  %v360_v33 = vsub.f32 %v316_v8, %v336_v12 }
 0x386   :  { %v354_v20 = vsub.f32 %v348_v17, %v351_v14 }
 0x388   :  { %v357_v22 = vmax.f32 %v354_v20, 0.0 }
 0x38a   :  { %v363_v24 = vadd.f32 1e-05, %v357_v22 }
 0x38c   :  { %1049 = vrsqrt.f32 %v363_v24 }
 0x396   :  { %v1050_v34 = vpop.eup %1049 }
 0x397   :  { %v369_v36 = vmul.f32 %v1050_v34, %v360_v33 }
 0x399   :  { %v385_v38 = vmul.f32 %v384_v35, %v369_v36 }
 0x39b   :  { %v1276_v40 = vadd.f32 %v385_v38, %v382_v37 }
 0x39d   :  { %836 = vst [vmem:[%s1467_s6] sm:$0xff] %v1276_v40  ;;  %425 = vrot.lane.b32.xlu1 %v1276_v40, %s1089_s29  ;;  %418 = vrot.lane.b32.xlu0 %v1276_v40, %s1088_s2  ;;  %v417_v30 = vmax.f32 %v1276_v40, 0.0 }
 0x3a1   :  { %432 = vrot.lane.b32.xlu1 %v1276_v40, %s1087_s1  ;;  %439 = vrot.lane.b32.xlu0 %v1276_v40, %s1090_s30 }
 0x3a5   :  { %446 = vrot.lane.b32.xlu1 %v1276_v40, %s1091_s7  ;;  %453 = vrot.lane.b32.xlu0 %v1276_v40, %s1092_s8 }
 0x3a9   :  { %460 = vrot.lane.b32.xlu1 %v1276_v40, %s1093_s9  ;;  %467 = vrot.lane.b32.xlu0 %v1276_v40, %s1094_s10 }
 0x3cd   :  { %332 = vadd.xlane.f32.xlu1 %v1286_v18 }
 0x40f   :  { %v426_v43 = vpop.permute.xlu1 %425  ;;  %v419_v44 = vpop.permute.xlu0 %418 }
 0x410   :  { %v427_v45 = vmul.f32 %v1171_v21, %v426_v43  ;;  %v420_v46 = vmul.f32 %v419_v44, %v1166_v19  ;;  %v422_v48 = vsel %vm143_vm2, %v419_v44, %v1276_v40  ;;  %v429_v50 = vsel %vm144_vm3, %v426_v43, %v1276_v40 }
 0x411   :  { %v423_v49 = vmax.f32 %v1276_v40, %v422_v48 }
 0x412   :  { %v431_v51 = vmax.f32 %v427_v45, 0.0  ;;  %v421_v52 = vadd.f32 %v420_v46, %v1276_v40  ;;  %v424_v54 = vmax.f32 %v420_v46, 0.0 }
 0x413   :  { %v433_v55 = vpop.permute.xlu1 %432  ;;  %v430_v56 = vmax.f32 %v423_v49, %v429_v50  ;;  %v440_v57 = vpop.permute.xlu0 %439  ;;  %v504_v50 = vld [vmem:[%s1464_s3 + $0x20] sm:$0xff] }
 0x414   :  { %v428_v58 = vadd.f32 %v427_v45, %v421_v52  ;;  %v434_v59 = vmul.f32 %v1178_v23, %v433_v55  ;;  %v436_v60 = vsel %vm145_vm4, %v433_v55, %v1276_v40  ;;  %v441_v62 = vmul.f32 %v1188_v28, %v440_v57 }
 0x415   :  { %v437_v63 = vmax.f32 %v430_v56, %v436_v60  ;;  %v1003_v0 = vpack.c.bf16 %v431_v51, %v424_v54  ;;  %v443_v4 = vsel %vm146_vm5, %v440_v57, %v1276_v40  ;;  %v340_v52 = vmul.f32 %v1286_v18, %v1286_v18  ;;  %v239_v54 = vld [vmem:[%s1464_s3 + $0x10] sm:$0xff] }
 0x416   :  { %v435_v2 = vadd.f32 %v434_v59, %v428_v58  ;;  %v438_v3 = vmax.f32 %v434_v59, 0.0  ;;  %v445_v5 = vmax.f32 %v441_v62, 0.0  ;;  %947 = vmatmul.mubr.msk.f32.gmra.mrb[4].mxu1 %vm240_vm10, %v239_v54 }
 0x417   :  { %v444_v8 = vmax.f32 %v437_v63, %v443_v4  ;;  %1004 = vmatprep.subr.bf16.mxu0 %v1003_v0  ;;  %v447_v9 = vpop.permute.xlu1 %446  ;;  %v454_v10 = vpop.permute.xlu0 %453  ;;  %988 = vmatprep.mubr.msk.f32.mxu1 %vm1085_vm0, %v1084_v1 }
 0x418   :  { %v442_v11 = vadd.f32 %v441_v62, %v435_v2  ;;  %v448_v12 = vmul.f32 %v1201_v39, %v447_v9  ;;  %v450_v13 = vsel %vm147_vm6, %v447_v9, %v1276_v40  ;;  %1006 = vmatpush3.bf16.msra.mxu0 %v1003_v0  ;;  %v455_v17 = vmul.f32 %v1212_v47, %v454_v10 }
 0x419   :  { %v451_v14 = vmax.f32 %v444_v8, %v450_v13  ;;  %v1007_v20 = vpack.c.bf16 %v445_v5, %v438_v3  ;;  %v457_v25 = vsel %vm148_vm7, %v454_v10, %v1276_v40 }
 0x41a   :  { %v449_v22 = vadd.f32 %v448_v12, %v442_v11  ;;  %v452_v24 = vmax.f32 %v448_v12, 0.0  ;;  %v459_v34 = vmax.f32 %v455_v17, 0.0 }
 0x41b   :  { %v458_v26 = vmax.f32 %v451_v14, %v457_v25  ;;  %1008 = vmatprep.subr.bf16.mxu0 %v1007_v20  ;;  %v461_v27 = vpop.permute.xlu1 %460  ;;  %v468_v29 = vpop.permute.xlu0 %467 }
 0x41c   :  { %v456_v31 = vadd.f32 %v455_v17, %v449_v22  ;;  %v462_v32 = vmul.f32 %v1222_v53, %v461_v27  ;;  %v464_v33 = vsel %vm149_vm8, %v461_v27, %v1276_v40  ;;  %1010 = vmatpush3.bf16.msra.mxu0 %v1007_v20  ;;  %v1011_v36 = vpack.c.bf16 %v452_v24, %v417_v30 }
 0x41d   :  { %v465_v35 = vmax.f32 %v458_v26, %v464_v33  ;;  %v469_v41 = vmul.f32 %v1237_v61, %v468_v29  ;;  %v471_v42 = vsel %vm150_vm9, %v468_v29, %v1276_v40  ;;  %v631_v30 = vstv %s873_s28 }
 0x41e   :  { %v463_v37 = vadd.f32 %v462_v32, %v456_v31  ;;  %v466_v38 = vmax.f32 %v462_v32, 0.0  ;;  %1012 = vmatprep.subr.bf16.mxu0 %v1011_v36  ;;  %v634_v31 = vstv %s874_s5 }
 0x41f   :  { %v1340_v43 = vmax.f32 %v465_v35, %v471_v42  ;;  %v473_v48 = vmax.f32 %v469_v41, 0.0  ;;  %v638_v35 = vstv %s875_s11 }
 0x420   :  { %v470_v44 = vadd.f32 %v469_v41, %v463_v37  ;;  %1014 = vmatpush3.bf16.msra.mxu0 %v1011_v36  ;;  %v1015_v45 = vpack.c.bf16 %v466_v38, %v459_v34  ;;  %v632_v36 = vmul.f32 %v631_v30, %v1276_v40  ;;  %v399_v41 = vstv %s862_s12 }
 0x421   :  { %489 = vadd.xlane.f32.xlu0 %v1340_v43  ;;  %v492_v49 = vmul.f32 %v1340_v43, %v1340_v43 }
 0x422   :  { %1016 = vmatprep.subr.bf16.mxu0 %v1015_v45  ;;  %v474_v46 = vmul.f32 %v470_v44, %v1252_v15 }
 0x424   :  { %1018 = vmatpush3.bf16.msra.mxu0 %v1015_v45  ;;  %475 = vadd.xlane.f32.xlu1 %v474_v46  ;;  %v478_v51 = vmul.f32 %v474_v46, %v474_v46 }
 0x425   :  { %965 = vmatprep.subr.mxu0 %v473_v48  ;;  %493 = vadd.xlane.f32.xlu0 %v492_v49 }
 0x428   :  { %966 = vmatpush3.msra.mxu0 %v473_v48 }
 0x429   :  { %968 = vmatmul.mubr.msk.f32.vlgmr.msra.gmra.mrb[2].mxu0 %vm240_vm10, %v504_v50  ;;  %479 = vadd.xlane.f32.xlu0 %v478_v51 }
 0x42d   :  { %344 = vadd.xlane.f32.xlu0 %v340_v52 }
 0x45a   :  { %v333_v55 = vpop.xlane.xlu1 %332 }
 0x45b   :  { %v337_v0 = vmul.f32 0.0078125, %v333_v55 }
 0x45d   :  { %v352_v9 = vmul.f32 %v337_v0, %v337_v0  ;;  %v361_v32 = vsub.f32 %v1286_v18, %v337_v0 }
 0x4ae   :  { %v490_v56 = vpop.xlane.xlu0 %489 }
 0x4af   :  { %v491_v57 = vmul.f32 0.0078125, %v490_v56 }
 0x4b1   :  { %v476_v58 = vpop.xlane.xlu1 %475  ;;  %v496_v60 = vmul.f32 %v491_v57, %v491_v57  ;;  %v499_v26 = vsub.f32 %v1340_v43, %v491_v57 }
 0x4b2   :  { %v494_v59 = vpop.xlane.xlu0 %493  ;;  %v477_v62 = vmul.f32 0.0078125, %v476_v58 }
 0x4b3   :  { %v495_v63 = vmul.f32 0.0078125, %v494_v59 }
 0x4b4   :  { %v482_v4 = vmul.f32 %v477_v62, %v477_v62  ;;  %v485_v27 = vsub.f32 %v474_v46, %v477_v62 }
 0x4b5   :  { %v497_v2 = vsub.f32 %v495_v63, %v496_v60  ;;  %v615_v63 = vstv %s869_s14 }
 0x4b6   :  { %v480_v3 = vpop.xlane.xlu0 %479 }
 0x4b7   :  { %v498_v5 = vmax.f32 %v497_v2, 0.0  ;;  %v481_v8 = vmul.f32 0.0078125, %v480_v3  ;;  %v616_v2 = vmul.f32 %v615_v63, %v1276_v40  ;;  %v622_v3 = vstv %s871_s15 }
 0x4b9   :  { %v500_v10 = vadd.f32 1e-05, %v498_v5  ;;  %v483_v11 = vsub.f32 %v481_v8, %v482_v4 }
 0x4ba   :  { %v345_v12 = vpop.xlane.xlu0 %344 }
 0x4bb   :  { %v484_v13 = vmax.f32 %v483_v11, 0.0  ;;  %v349_v14 = vmul.f32 0.0078125, %v345_v12  ;;  %1051 = vrsqrt.f32 %v500_v10 }
 0x4bd   :  { %v486_v17 = vadd.f32 1e-05, %v484_v13  ;;  %v355_v20 = vsub.f32 %v349_v14, %v352_v9  ;;  %v626_v9 = vstv %s872_s16 }
 0x4bf   :  { %1053 = vrsqrt.f32 %v486_v17  ;;  %v358_v22 = vmax.f32 %v355_v20, 0.0 }
 0x4c1   :  { %v364_v24 = vadd.f32 1e-05, %v358_v22 }
 0x4c3   :  { %1055 = vrsqrt.f32 %v364_v24 }
 0x4c5   :  { %v1052_v25 = vpop.eup %1051 }
 0x4c6   :  { %v502_v33 = vmul.f32 %v1052_v25, %v499_v26 }
 0x4c8   :  { %v639_v42 = vmul.f32 %v638_v35, %v502_v33  ;;  %v623_v10 = vmul.f32 %v622_v3, %v502_v33 }
 0x4c9   :  { %v1054_v29 = vpop.eup %1053 }
 0x4ca   :  { %v488_v34 = vmul.f32 %v1054_v29, %v485_v27 }
 0x4cc   :  { %v635_v37 = vmul.f32 %v634_v31, %v488_v34 }
 0x4cd   :  { %v1056_v38 = vpop.eup %1055 }
 0x4ce   :  { %v636_v44 = vadd.f32 %v635_v37, %v632_v36  ;;  %v370_v45 = vmul.f32 %v1056_v38, %v361_v32 }
 0x4d0   :  { %v400_v48 = vmul.f32 %v399_v41, %v370_v45  ;;  %v1361_v49 = vadd.f32 %v639_v42, %v636_v44 }
 0x4d2   :  { %v401_v43 = vadd.f32 %v400_v48, %v1271_v6  ;;  %v618_v6 = vstv %s870_s13 }
 0x4d3   :  { %v619_v0 = vmul.f32 %v618_v6, %v488_v34 }
 0x4d5   :  { %v620_v4 = vadd.f32 %v619_v0, %v616_v2 }
 0x4d7   :  { %v624_v12 = vadd.f32 %v623_v10, %v620_v4 }
 0x4e9   :  { %v1366_v51 = vpop.f32.mrb[4].mxu1 }
 0x4ea   :  { %v948_v52 = vpop.f32.mrb[5].mxu1  ;;  %v341_v40 = vmul.f32 %v1366_v51, %v1366_v51 }
 0x4fc   :  { %v1364_v46 = vpop.f32.mrb[2].mxu0 }
 0x4fd   :  { %v577_v50 = vpop.f32.mrb[3].mxu0  ;;  %v593_v20 = vmul.f32 %v1364_v46, %v1364_v46 }
 0x4fe   :  { %586 = vadd.xlane.f32.xlu1 %v577_v50  ;;  %v592_v18 = vmul.f32 %v577_v50, %v577_v50 }
 0x502   :  { %594 = vadd.xlane.f32.xlu1 %v592_v18 }
 0x58b   :  { %v587_v54 = vpop.xlane.xlu1 %586 }
 0x58c   :  { %v590_v55 = vmul.f32 0.0078125, %v587_v54 }
 0x58e   :  { %v600_v57 = vmul.f32 %v590_v55, %v590_v55  ;;  %v606_v5 = vsub.f32 %v577_v50, %v590_v55 }
 0x58f   :  { %v595_v56 = vpop.xlane.xlu1 %594 }
 0x590   :  { %v598_v58 = vmul.f32 0.0078125, %v595_v56 }
 0x592   :  { %v602_v59 = vsub.f32 %v598_v58, %v600_v57 }
 0x594   :  { %v604_v60 = vmax.f32 %v602_v59, 0.0 }
 0x596   :  { %v608_v62 = vadd.f32 1e-05, %v604_v60 }
 0x598   :  { %1057 = vrsqrt.f32 %v608_v62 }
 0x5a2   :  { %v1058_v8 = vpop.eup %1057 }
 0x5a3   :  { %v612_v11 = vmul.f32 %v1058_v8, %v606_v5 }
 0x5a5   :  { %v627_v13 = vmul.f32 %v626_v9, %v612_v11 }
 0x5a7   :  { %v628_v14 = vadd.f32 %v627_v13, %v624_v12 }
 0x5a9   :  { %v1369_v17 = vadd.f32 %v628_v14, %v401_v43 }
 0x5ab   :  { %837 = vst [vmem:[%s1467_s6 + $0x8] sm:$0xff] %v1369_v17  ;;  %654 = vrot.lane.b32.xlu1 %v1369_v17, %s1089_s29  ;;  %647 = vrot.lane.b32.xlu0 %v1369_v17, %s1088_s2  ;;  %v646_v57 = vmax.f32 %v1369_v17, 0.0  ;;  %s876_s29 = sld [smem:[#allocation2 + $0x204]] }
 0x5af   :  { %661 = vrot.lane.b32.xlu1 %v1369_v17, %s1087_s1  ;;  %668 = vrot.lane.b32.xlu0 %v1369_v17, %s1090_s30  ;;  %s879_s30 = sld [smem:[#allocation2 + $0x282]] }
 0x5b3   :  { %675 = vrot.lane.b32.xlu1 %v1369_v17, %s1091_s7  ;;  %682 = vrot.lane.b32.xlu0 %v1369_v17, %s1092_s8  ;;  %s878_s7 = sld [smem:[#allocation2 + $0x281]]  ;;  %s880_s8 = sld [smem:[#allocation2 + $0x283]] }
 0x5b7   :  { %689 = vrot.lane.b32.xlu1 %v1369_v17, %s1093_s9  ;;  %696 = vrot.lane.b32.xlu0 %v1369_v17, %s1094_s10  ;;  %s881_s9 = sld [smem:[#allocation2 + $0x284]] }
 0x5d6   :  { %334 = vadd.xlane.f32.xlu0 %v1366_v51 }
 0x5da   :  { %588 = vadd.xlane.f32.xlu0 %v1364_v46 }
 0x5db   :  { %346 = vadd.xlane.f32.xlu1 %v341_v40 }
 0x5de   :  { %596 = vadd.xlane.f32.xlu0 %v593_v20 }
 0x61d   :  { %v655_v22 = vpop.permute.xlu1 %654  ;;  %v648_v24 = vpop.permute.xlu0 %647 }
 0x61e   :  { %v656_v25 = vmul.f32 %v1171_v21, %v655_v22  ;;  %v649_v26 = vmul.f32 %v648_v24, %v1166_v19  ;;  %v651_v27 = vsel %vm143_vm2, %v648_v24, %v1369_v17  ;;  %v658_v30 = vsel %vm144_vm3, %v655_v22, %v1369_v17 }
 0x61f   :  { %v652_v29 = vmax.f32 %v1369_v17, %v651_v27 }
 0x620   :  { %v660_v31 = vmax.f32 %v656_v25, 0.0  ;;  %v650_v32 = vadd.f32 %v649_v26, %v1369_v17  ;;  %v653_v33 = vmax.f32 %v649_v26, 0.0 }
 0x621   :  { %v662_v34 = vpop.permute.xlu1 %661  ;;  %v659_v35 = vmax.f32 %v652_v29, %v658_v30  ;;  %v669_v36 = vpop.permute.xlu0 %668 }
 0x622   :  { %v1020_v37 = vpack.c.bf16 %v660_v31, %v653_v33  ;;  %v657_v38 = vadd.f32 %v656_v25, %v650_v32  ;;  %v663_v41 = vmul.f32 %v1178_v23, %v662_v34  ;;  %v665_v19 = vsel %vm145_vm4, %v662_v34, %v1369_v17 }
 0x623   :  { %v666_v42 = vmax.f32 %v659_v35, %v665_v19  ;;  %v670_v44 = vmul.f32 %v1188_v28, %v669_v36  ;;  %v672_v48 = vsel %vm146_vm5, %v669_v36, %v1369_v17 }
 0x624   :  { %v664_v21 = vadd.f32 %v663_v41, %v657_v38  ;;  %v667_v45 = vmax.f32 %v663_v41, 0.0  ;;  %1021 = vmatpush3.bf16.msra.mxu1 %v1020_v37 }
 0x625   :  { %v673_v43 = vmax.f32 %v666_v42, %v672_v48  ;;  %v674_v50 = vmax.f32 %v670_v44, 0.0  ;;  %v676_v18 = vpop.permute.xlu1 %675  ;;  %v683_v52 = vpop.permute.xlu0 %682  ;;  %1022 = vmatprep.subr.bf16.mxu1 %v1086_v16  ;;  %v642_v48 = vstv %s876_s29 }
 0x626   :  { %v671_v54 = vadd.f32 %v670_v44, %v664_v21  ;;  %v677_v23 = vmul.f32 %v1201_v39, %v676_v18  ;;  %v679_v55 = vsel %vm147_vm6, %v676_v18, %v1369_v17  ;;  %v684_v60 = vmul.f32 %v1212_v47, %v683_v52 }
 0x627   :  { %v1023_v56 = vpack.c.bf16 %v674_v50, %v667_v45  ;;  %v680_v58 = vmax.f32 %v673_v43, %v679_v55  ;;  %v686_v62 = vsel %vm148_vm7, %v683_v52, %v1369_v17 }
 0x628   :  { %v678_v28 = vadd.f32 %v677_v23, %v671_v54  ;;  %v681_v59 = vmax.f32 %v677_v23, 0.0  ;;  %v688_v8 = vmax.f32 %v684_v60, 0.0 }
 0x629   :  { %v687_v6 = vmax.f32 %v680_v58, %v686_v62  ;;  %1024 = vmatpush3.bf16.msra.mxu1 %v1023_v56  ;;  %v690_v63 = vpop.permute.xlu1 %689  ;;  %v697_v0 = vpop.permute.xlu0 %696 }
 0x62a   :  { %v1026_v2 = vpack.c.bf16 %v681_v59, %v646_v57  ;;  %v685_v3 = vadd.f32 %v684_v60, %v678_v28  ;;  %v691_v39 = vmul.f32 %v1222_v53, %v690_v63  ;;  %v693_v4 = vsel %vm149_vm8, %v690_v63, %v1369_v17  ;;  %1025 = vmatprep.subr.bf16.mxu1 %v1086_v16 }
 0x62b   :  { %v694_v5 = vmax.f32 %v687_v6, %v693_v4  ;;  %v700_v47 = vsel %vm150_vm9, %v697_v0, %v1369_v17  ;;  %v698_v11 = vmul.f32 %v1237_v61, %v697_v0  ;;  %v732_v61 = vld [vmem:[%s1464_s3 + $0x28] sm:$0xff]  ;;  %s866_s3 = sld [smem:[#allocation2 + $0x184]] }
 0x62c   :  { %v692_v9 = vadd.f32 %v691_v39, %v685_v3  ;;  %v695_v10 = vmax.f32 %v691_v39, 0.0 }
 0x62d   :  { %v1434_v12 = vmax.f32 %v694_v5, %v700_v47  ;;  %1027 = vmatpush3.bf16.msra.mxu1 %v1026_v2  ;;  %v702_v40 = vmax.f32 %v698_v11, 0.0 }
 0x62e   :  { %v1029_v13 = vpack.c.bf16 %v695_v10, %v688_v8  ;;  %1028 = vmatprep.subr.bf16.mxu1 %v1086_v16  ;;  %v699_v53 = vadd.f32 %v698_v11, %v692_v9 }
 0x62f   :  { %718 = vadd.xlane.f32.xlu0 %v1434_v12  ;;  %v721_v14 = vmul.f32 %v1434_v12, %v1434_v12 }
 0x630   :  { %v1442_v20 = vmul.f32 %v699_v53, %v1252_v15 }
 0x631   :  { %1030 = vmatpush3.bf16.msra.mxu1 %v1029_v13  ;;  %722 = vadd.xlane.f32.xlu1 %v721_v14  ;;  %v414_v19 = vstv %s866_s3 }
 0x632   :  { %986 = vmatprep.subr.mxu1 %v1084_v1  ;;  %v707_v16 = vmul.f32 %v1442_v20, %v1442_v20 }
 0x635   :  { %987 = vmatpush3.msra.mxu1 %v702_v40  ;;  %704 = vadd.xlane.f32.xlu1 %v1442_v20 }
 0x636   :  { %989 = vmatmul.mubr.msk.f32.vlgmr.msra.gmra.mrb[6].mxu1 %vm240_vm10, %v732_v61  ;;  %v824_v61 = vstv %s879_s30 }
 0x639   :  { %708 = vadd.xlane.f32.xlu1 %v707_v16 }
 0x663   :  { %v335_v22 = vpop.xlane.xlu0 %334 }
 0x664   :  { %v338_v24 = vmul.f32 0.0078125, %v335_v22  ;;  %v821_v22 = vstv %s878_s7 }
 0x666   :  { %v353_v1 = vmul.f32 %v338_v24, %v338_v24  ;;  %v362_v38 = vsub.f32 %v1366_v51, %v338_v24 }
 0x667   :  { %v589_v25 = vpop.xlane.xlu0 %588 }
 0x668   :  { %v591_v26 = vmul.f32 0.0078125, %v589_v25  ;;  %v347_v15 = vpop.xlane.xlu1 %346 }
 0x669   :  { %v350_v27 = vmul.f32 0.0078125, %v347_v15  ;;  %v828_v15 = vstv %s880_s8 }
 0x66a   :  { %v601_v31 = vmul.f32 %v591_v26, %v591_v26  ;;  %v607_v44 = vsub.f32 %v1364_v46, %v591_v26  ;;  %v822_v26 = vmul.f32 %v821_v22, %v1369_v17 }
 0x66b   :  { %v356_v29 = vsub.f32 %v350_v27, %v353_v1  ;;  %v597_v30 = vpop.xlane.xlu0 %596 }
 0x66c   :  { %v599_v32 = vmul.f32 0.0078125, %v597_v30 }
 0x66d   :  { %v359_v33 = vmax.f32 %v356_v29, 0.0 }
 0x66e   :  { %v603_v34 = vsub.f32 %v599_v32, %v601_v31  ;;  %v832_v31 = vstv %s881_s9 }
 0x66f   :  { %v365_v35 = vadd.f32 1e-05, %v359_v33 }
 0x670   :  { %v605_v36 = vmax.f32 %v603_v34, 0.0 }
 0x671   :  { %1059 = vrsqrt.f32 %v365_v35 }
 0x672   :  { %v609_v37 = vadd.f32 1e-05, %v605_v36 }
 0x674   :  { %1061 = vrsqrt.f32 %v609_v37 }
 0x67b   :  { %v1060_v41 = vpop.eup %1059 }
 0x67c   :  { %v371_v42 = vmul.f32 %v1060_v41, %v362_v38 }
 0x67e   :  { %v1062_v21 = vpop.eup %1061  ;;  %v415_v45 = vmul.f32 %v414_v19, %v371_v42 }
 0x67f   :  { %v613_v43 = vmul.f32 %v1062_v21, %v607_v44 }
 0x680   :  { %v416_v50 = vadd.f32 %v415_v45, %v1273_v7 }
 0x681   :  { %v643_v18 = vmul.f32 %v642_v48, %v613_v43 }
 0x683   :  { %v644_v52 = vadd.f32 %v643_v18, %v1361_v49 }
 0x685   :  { %v645_v54 = vadd.f32 %v644_v52, %v416_v50 }
 0x6bc   :  { %v719_v46 = vpop.xlane.xlu0 %718 }
 0x6bd   :  { %v720_v60 = vmul.f32 0.0078125, %v719_v46 }
 0x6be   :  { %v723_v51 = vpop.xlane.xlu1 %722 }
 0x6bf   :  { %v725_v63 = vmul.f32 %v720_v60, %v720_v60  ;;  %v724_v7 = vmul.f32 0.0078125, %v723_v51  ;;  %v728_v24 = vsub.f32 %v1434_v12, %v720_v60 }
 0x6c1   :  { %v726_v2 = vsub.f32 %v724_v7, %v725_v63 }
 0x6c2   :  { %v705_v57 = vpop.xlane.xlu1 %704 }
 0x6c3   :  { %v706_v28 = vmul.f32 0.0078125, %v705_v57  ;;  %v727_v3 = vmax.f32 %v726_v2, 0.0 }
 0x6c5   :  { %v711_v62 = vmul.f32 %v706_v28, %v706_v28  ;;  %v729_v4 = vadd.f32 1e-05, %v727_v3  ;;  %v714_v14 = vsub.f32 %v1442_v20, %v706_v28 }
 0x6c6   :  { %v709_v58 = vpop.xlane.xlu1 %708 }
 0x6c7   :  { %v710_v59 = vmul.f32 0.0078125, %v709_v58 }
 0x6c9   :  { %v712_v6 = vsub.f32 %v710_v59, %v711_v62 }
 0x6cb   :  { %v713_v0 = vmax.f32 %v712_v6, 0.0 }
 0x6cd   :  { %v715_v49 = vadd.f32 1e-05, %v713_v0 }
 0x6cf   :  { %1063 = vrsqrt.f32 %v715_v49 }
 0x6d0   :  { %1065 = vrsqrt.f32 %v729_v4 }
 0x6d9   :  { %v1064_v13 = vpop.eup %1063 }
 0x6da   :  { %v717_v40 = vmul.f32 %v1064_v13, %v714_v14  ;;  %v1066_v16 = vpop.eup %1065 }
 0x6db   :  { %v731_v25 = vmul.f32 %v1066_v16, %v728_v24 }
 0x6dc   :  { %v825_v1 = vmul.f32 %v824_v61, %v717_v40 }
 0x6dd   :  { %v829_v32 = vmul.f32 %v828_v15, %v731_v25 }
 0x6de   :  { %v826_v27 = vadd.f32 %v825_v1, %v822_v26 }
 0x6e0   :  { %v830_v33 = vadd.f32 %v829_v32, %v826_v27 }
 0x709   :  { %v802_v23 = vpop.f32.mrb[6].mxu1 }
 0x70a   :  { %806 = vadd.xlane.f32.xlu0 %v802_v23  ;;  %v990_v55 = vpop.f32.mrb[7].mxu1  ;;  %v809_v56 = vmul.f32 %v802_v23, %v802_v23 }
 0x70c   :  { %810 = vadd.xlane.f32.xlu1 %v809_v56 }
 0x797   :  { %v807_v39 = vpop.xlane.xlu0 %806 }
 0x798   :  { %v808_v5 = vmul.f32 0.0078125, %v807_v39 }
 0x799   :  { %v811_v8 = vpop.xlane.xlu1 %810 }
 0x79a   :  { %v813_v9 = vmul.f32 %v808_v5, %v808_v5  ;;  %v812_v10 = vmul.f32 0.0078125, %v811_v8  ;;  %v816_v29 = vsub.f32 %v802_v23, %v808_v5 }
 0x79c   :  { %v814_v47 = vsub.f32 %v812_v10, %v813_v9 }
 0x79e   :  { %v815_v11 = vmax.f32 %v814_v47, 0.0 }
 0x7a0   :  { %v817_v53 = vadd.f32 1e-05, %v815_v11 }
 0x7a2   :  { %1067 = vrsqrt.f32 %v817_v53 }
 0x7ac   :  { %v1068_v30 = vpop.eup %1067 }
 0x7ad   :  { %v819_v20 = vmul.f32 %v1068_v30, %v816_v29 }
 0x7af   :  { %v833_v34 = vmul.f32 %v832_v31, %v819_v20 }
 0x7b1   :  { %v834_v35 = vadd.f32 %v833_v34, %v830_v33 }
 0x7b3   :  { %v835_v36 = vadd.f32 %v834_v35, %v645_v54 }
 0x7b5   :  { %838 = vst [vmem:[%s1467_s6 + $0x10] sm:$0xff] %v835_v36 }
 0x7b6   :  { %843 = vsyncpa [#allocation3], 1 }

</bundles_post_ra>
